<compile_context>
chip_gen: v7x
topology: tpu7x:2x2x1
jax: 0.10.0
libtpu: 0.0.40
codegen_flags: <defaults>
</compile_context>

<pallas_src>
import jax
import jax.numpy as jnp
from jax.experimental import pallas as pl
from jax.experimental.pallas import tpu as pltpu

BN_EPS = 1e-5
EMBEDDING_DIM = 1024


# ---------------------------------------------------------------------------
# Kernel
# ---------------------------------------------------------------------------
def _classifier_kernel(
    pos_ref, neg_ref,        # (bt, D) activations (f32 or bf16)
    wp_ref, wn_ref,          # (D, 256) int8; per-channel scale folded downstream
    wcomb_ref,               # (512, 384) bf16: cols 0:256 combined L1, cols 256:384 choice L1
                             #   (BN(pos/neg) + int8 scales folded into rows; pos rows first)
    wc2_ref,                 # (256, 128) bf16, BN1 folded
    wheads_ref,              # (256, 128) bf16: rows 0:128 -> binary col 0 (BN2 folded),
                             #                  rows 128:256 -> choice cols 1:3
    bpn_ref,                 # (2, 256) f32: [bp/scale_p, bn/scale_n]
    bcomb_ref,               # (1, 384) f32: [bc1' | bch1']
    btail_ref,               # (2, 128) f32: [bc2', b_heads]
    out_ref,                 # (bt, 128) f32 output slab
):
    f32 = jnp.float32
    bf16 = jnp.bfloat16

    pos = pos_ref[...].astype(bf16)
    neg = neg_ref[...].astype(bf16)

    # Dequantize int8 weights to bf16 (scales already folded into wcomb rows /
    # the bpn biases, so the raw integer values are the correct operand here).
    wp = wp_ref[...].astype(f32).astype(bf16)
    wn = wn_ref[...].astype(f32).astype(bf16)

    # pos/neg processors: Linear -> ReLU (eval BN folded downstream, Dropout=id).
    relu_p = jnp.maximum(
        jnp.dot(pos, wp, preferred_element_type=f32) + bpn_ref[0:1, :], 0.0)
    relu_n = jnp.maximum(
        jnp.dot(neg, wn, preferred_element_type=f32) + bpn_ref[1:2, :], 0.0)
    relu_p16 = relu_p.astype(bf16)
    relu_n16 = relu_n.astype(bf16)

    # Merged combined/choice first layers as ONE split dot -> (bt, 384).
    hcomb = (jnp.dot(relu_p16, wcomb_ref[0:256, :], preferred_element_type=f32)
             + jnp.dot(relu_n16, wcomb_ref[256:512, :], preferred_element_type=f32)
             + bcomb_ref[...])
    relu_comb = jnp.maximum(hcomb, 0.0)
    relu1 = relu_comb[:, 0:256].astype(bf16)      # combined-network hidden
    relu_c1 = relu_comb[:, 256:384].astype(bf16)  # choice hidden

    # combined Linear(256,128) with BN1 folded.
    h2 = jnp.dot(relu1, wc2_ref[...], preferred_element_type=f32) + btail_ref[0:1, :]
    relu2 = jnp.maximum(h2, 0.0).astype(bf16)

    # Fused heads -> one lane-dense (bt, 128) slab.
    slab = (jnp.dot(relu2, wheads_ref[0:128, :], preferred_element_type=f32)
            + jnp.dot(relu_c1, wheads_ref[128:256, :], preferred_element_type=f32)
            + btail_ref[1:2, :])

    lane = jax.lax.broadcasted_iota(jnp.int32, slab.shape, 1)
    sig0 = jax.nn.sigmoid(slab[:, 0:1])           # only column 0 needs sigmoid
    out_ref[...] = jnp.where(lane == 0, sig0, slab)


# ---------------------------------------------------------------------------
# Wrapper
# ---------------------------------------------------------------------------
@jax.jit
def binary_choice_classifier(pos_embeddings, neg_embeddings, kparams):
    """Full forward pass; batch-tiled grid, weights VMEM-resident across steps."""
    B, D = pos_embeddings.shape

    # Batch tile: sublane-aligned; aim for >=2 grid steps when B_pad >= 16 so
    # dual-TC chips (v7x) get both cores; cap at 512 rows (per-step VMEM stays
    # ~11-12 MiB, well inside the raised scoped-VMEM limit on all generations).
    B8 = -(-B // 8) * 8
    half = -(-B8 // 2)
    bt = min(512, -(-half // 8) * 8)
    bt = max(bt, 8)
    n_tiles = -(-B8 // bt)
    B_pad = n_tiles * bt
    if B_pad != B:
        pos_embeddings = jnp.pad(pos_embeddings, ((0, B_pad - B), (0, 0)))
        neg_embeddings = jnp.pad(neg_embeddings, ((0, B_pad - B), (0, 0)))

    act_spec = pl.BlockSpec((bt, D), lambda i: (i, 0))
    const = lambda shape: pl.BlockSpec(shape, lambda i: (0, 0))  # noqa: E731

    weight_elems = D * 256 * 2 + 512 * 384 + 256 * 128 + 256 * 128
    act_itemsize = pos_embeddings.dtype.itemsize
    flops = 2 * B_pad * weight_elems
    bytes_accessed = (2 * B_pad * D * act_itemsize       # activations in
                      + D * 256 * 2 * 1                  # int8 wp/wn
                      + (512 * 384 + 2 * 256 * 128) * 2  # bf16 weights
                      + (2 * 256 + 384 + 2 * 128) * 4    # f32 packed biases
                      + B_pad * 128 * 4)                 # f32 output slab

    slab = pl.pallas_call(
        _classifier_kernel,
        out_shape=jax.ShapeDtypeStruct((B_pad, 128), jnp.float32),
        grid=(n_tiles,),
        in_specs=[
            act_spec, act_spec,
            const((D, 256)), const((D, 256)),
            const((512, 384)), const((256, 128)), const((256, 128)),
            const((2, 256)), const((1, 384)), const((2, 128)),
        ],
        out_specs=pl.BlockSpec((bt, 128), lambda i: (i, 0)),
        compiler_params=pltpu.CompilerParams(
            dimension_semantics=("parallel",),
            vmem_limit_bytes=48 * 1024 * 1024),
        cost_estimate=pl.CostEstimate(
            flops=flops,
            transcendentals=B_pad,
            bytes_accessed=bytes_accessed),
    )(pos_embeddings, neg_embeddings,
      kparams["wp_q"], kparams["wn_q"], kparams["wcomb"], kparams["wc2"],
      kparams["w_heads"], kparams["b_pn"], kparams["b_comb"], kparams["b_tail"])

    return {
        "binary_output": slab[:B, 0:1],
        "choice_logits": slab[:B, 1:3],
    }


# ---------------------------------------------------------------------------
# Parameter construction / preparation
# ---------------------------------------------------------------------------
def init_params(key, embedding_dim=EMBEDDING_DIM):
    """Original (PyTorch-equivalent) params: weights (in,out) = torch weight.T."""
    ks = iter(jax.random.split(key, 64))

    def lin(d_in, d_out, scale=0.02):
        w = scale * jax.random.normal(next(ks), (d_in, d_out), jnp.float32)
        b = scale * jax.random.normal(next(ks), (1, d_out), jnp.float32)
        return w, b

    def bn(d):
        gamma = 1.0 + 0.1 * jax.random.normal(next(ks), (1, d), jnp.float32)
        beta = 0.1 * jax.random.normal(next(ks), (1, d), jnp.float32)
        mean = 0.1 * jax.random.normal(next(ks), (1, d), jnp.float32)
        var = jax.random.uniform(next(ks), (1, d), jnp.float32, 0.5, 1.5)
        return gamma, beta, mean, var

    p = {}
    p["wp"], p["bp"] = lin(embedding_dim, 256)
    p["gp"], p["betap"], p["mp"], p["vp"] = bn(256)
    p["wn"], p["bn"] = lin(embedding_dim, 256)
    p["gn"], p["betan"], p["mn"], p["vn"] = bn(256)
    p["wc1"], p["bc1"] = lin(512, 256)
    p["gc1"], p["betac1"], p["mc1"], p["vc1"] = bn(256)
    p["wc2"], p["bc2"] = lin(256, 128)
    p["gc2"], p["betac2"], p["mc2"], p["vc2"] = bn(128)
    p["wc3"], p["bc3"] = lin(128, 1)
    p["wch1"], p["bch1"] = lin(512, 128)
    p["wch2"], p["bch2"] = lin(128, 2)
    return p


def prepare_kernel_params(p):
    """One-time prep: fold eval BN into following Linears, int8-quantize the two
    big weights (scales folded into the merged next-layer weight / biases),
    merge wc1+wch1, build the fused head, pack biases, cast weights to bf16."""

    def scale_shift(g, beta, m, v):
        s = g * jax.lax.rsqrt(v + BN_EPS)   # (1, d)
        t = beta - m * s                    # (1, d)
        return s, t

    sp, tp = scale_shift(p["gp"], p["betap"], p["mp"], p["vp"])
    sn, tn = scale_shift(p["gn"], p["betan"], p["mn"], p["vn"])
    s1, t1 = scale_shift(p["gc1"], p["betac1"], p["mc1"], p["vc1"])
    s2, t2 = scale_shift(p["gc2"], p["betac2"], p["mc2"], p["vc2"])

    # Per-output-channel int8 quantization of the two big (D,256) weights.
    def quant_i8(w):
        amax = jnp.max(jnp.abs(w), axis=0, keepdims=True)      # (1, 256)
        scale = jnp.maximum(amax, 1e-30) / 127.0
        q = jnp.clip(jnp.round(w / scale), -127.0, 127.0).astype(jnp.int8)
        return q, scale

    wp_q, qsp = quant_i8(p["wp"])
    wn_q, qsn = quant_i8(p["wn"])
    bp_adj = p["bp"] / qsp      # ReLU commutes with positive per-channel scale
    bn_adj = p["bn"] / qsn

    # BN(pos)/BN(neg) AND int8 dequant scales fold into the rows of the merged
    # first-layer weight (torch.cat order: pos rows first, then neg).
    row_scale_p = (sp * qsp).T  # (256, 1)
    row_scale_n = (sn * qsn).T
    wc1_top = p["wc1"][:256] * row_scale_p
    wc1_bot = p["wc1"][256:] * row_scale_n
    bc1 = p["bc1"] + tp @ p["wc1"][:256] + tn @ p["wc1"][256:]
    wch1_top = p["wch1"][:256] * row_scale_p
    wch1_bot = p["wch1"][256:] * row_scale_n
    bch1 = p["bch1"] + tp @ p["wch1"][:256] + tn @ p["wch1"][256:]

    wcomb = jnp.concatenate(
        [jnp.concatenate([wc1_top, wc1_bot], axis=0),     # (512, 256)
         jnp.concatenate([wch1_top, wch1_bot], axis=0)],  # (512, 128)
        axis=1)                                           # (512, 384)
    bcomb = jnp.concatenate([bc1, bch1], axis=1)          # (1, 384)

    # BN1 folds into wc2, BN2 folds into wc3.
    wc2 = p["wc2"] * s1.T
    bc2 = p["bc2"] + t1 @ p["wc2"]
    wc3 = p["wc3"] * s2.T
    bc3 = p["bc3"] + t2 @ p["wc3"]          # (1,1)

    # Fused output heads (256,128): rows 0:128 (from h2) feed col 0 (binary),
    # rows 128:256 (from choice hidden) feed cols 1:3 (choice logits).
    w_heads = jnp.zeros((256, 128), jnp.float32)
    w_heads = w_heads.at[0:128, 0:1].set(wc3)
    w_heads = w_heads.at[128:256, 1:3].set(p["wch2"])
    b_heads = jnp.zeros((1, 128), jnp.float32)
    b_heads = b_heads.at[0, 0].set(bc3[0, 0])
    b_heads = b_heads.at[0, 1:3].set(p["bch2"][0])

    wdt = jnp.bfloat16
    return {
        "wp_q": wp_q,                                        # (D,256) int8
        "wn_q": wn_q,                                        # (D,256) int8
        "wcomb": wcomb.astype(wdt),                          # (512,384) bf16
        "wc2": wc2.astype(wdt),                              # (256,128) bf16
        "w_heads": w_heads.astype(wdt),                      # (256,128) bf16
        "b_pn": jnp.concatenate([bp_adj, bn_adj], axis=0),   # (2,256) f32
        "b_comb": bcomb,                                     # (1,384) f32
        "b_tail": jnp.concatenate([bc2, b_heads], axis=0),   # (2,128) f32
    }


# ---------------------------------------------------------------------------
# References
# ---------------------------------------------------------------------------
def _reference_forward(pos, neg, p):
    """Exact f32 eval-mode semantics of the original PyTorch module."""
    def bn(x, g, b, m, v):
        return (x - m) * (g * jax.lax.rsqrt(v + BN_EPS)) + b

    pf = bn(jnp.maximum(pos @ p["wp"] + p["bp"], 0.0),
            p["gp"], p["betap"], p["mp"], p["vp"])
    nf = bn(jnp.maximum(neg @ p["wn"] + p["bn"], 0.0),
            p["gn"], p["betan"], p["mn"], p["vn"])
    comb = jnp.concatenate([pf, nf], axis=1)
    h1 = bn(jnp.maximum(comb @ p["wc1"] + p["bc1"], 0.0),
            p["gc1"], p["betac1"], p["mc1"], p["vc1"])
    h2 = bn(jnp.maximum(h1 @ p["wc2"] + p["bc2"], 0.0),
            p["gc2"], p["betac2"], p["mc2"], p["vc2"])
    binary = jax.nn.sigmoid(h2 @ p["wc3"] + p["bc3"])
    c1 = jnp.maximum(comb @ p["wch1"] + p["bch1"], 0.0)
    choice = c1 @ p["wch2"] + p["bch2"]
    return binary, choice


def _matched_reference(pos, neg, kp):
    """Pure-JAX replica of the folded / int8 / bf16 kernel math (tight check)."""
    f32, bf16 = jnp.float32, jnp.bfloat16
    d = lambda a, b: jnp.dot(a, b, preferred_element_type=f32)  # noqa: E731
    wp = kp["wp_q"].astype(f32).astype(bf16)
    wn = kp["wn_q"].astype(f32).astype(bf16)
    rp = jnp.maximum(d(pos.astype(bf16), wp) + kp["b_pn"][0:1], 0.0)
    rn = jnp.maximum(d(neg.astype(bf16), wn) + kp["b_pn"][1:2], 0.0)
    rp16, rn16 = rp.astype(bf16), rn.astype(bf16)
    hcomb = jnp.maximum(
        d(rp16, kp["wcomb"][:256]) + d(rn16, kp["wcomb"][256:]) + kp["b_comb"], 0.0)
    r1 = hcomb[:, 0:256].astype(bf16)
    rc1 = hcomb[:, 256:384].astype(bf16)
    r2 = jnp.maximum(d(r1, kp["wc2"]) + kp["b_tail"][0:1], 0.0).astype(bf16)
    slab = (d(r2, kp["w_heads"][:128]) + d(rc1, kp["w_heads"][128:])
            + kp["b_tail"][1:2])
    return jax.nn.sigmoid(slab[:, 0:1]), slab[:, 1:3]


# ---------------------------------------------------------------------------
if __name__ == "__main__":
    BATCH = 8

    key = jax.random.PRNGKey(0)
    k_params, k_pos, k_neg = jax.random.split(key, 3)

    params = init_params(k_params, EMBEDDING_DIM)
    kparams = prepare_kernel_params(params)

    pos_embeddings = jax.random.normal(k_pos, (BATCH, EMBEDDING_DIM), jnp.float32)
    neg_embeddings = jax.random.normal(k_neg, (BATCH, EMBEDDING_DIM), jnp.float32)

    out = binary_choice_classifier(pos_embeddings, neg_embeddings, kparams)
    jax.block_until_ready(out)

    assert out["binary_output"].shape == (BATCH, 1)
    assert out["choice_logits"].shape == (BATCH, 2)

    # Tight check: kernel vs numerics-matched (folded, int8/bf16) JAX reference.
    mb, mc = _matched_reference(pos_embeddings, neg_embeddings, kparams)
    assert jnp.allclose(out["binary_output"], mb, atol=5e-3, rtol=5e-3)
    assert jnp.allclose(out["choice_logits"], mc, atol=5e-3, rtol=5e-3)

    # Loose check: kernel vs original f32 eval-mode semantics (int8 weights +
    # bf16 activations shift results at the ~1e-3 level).
    rb, rc = _reference_forward(pos_embeddings, neg_embeddings, params)
    assert jnp.allclose(out["binary_output"], rb, atol=3e-2, rtol=3e-2)
    assert jnp.allclose(out["choice_logits"], rc, atol=3e-2, rtol=3e-2)

    print("KERNEL_OK")
</pallas_src>

<mosaic_0001>
module attributes {stable_mosaic.version = 11 : i64} {
  func.func @_classifier_kernel(%arg0: i32, %arg1: memref<8x1024xf32, #tpu.memory_space<vmem>>, %arg2: memref<8x1024xf32, #tpu.memory_space<vmem>>, %arg3: memref<1024x256xi8, #tpu.memory_space<vmem>>, %arg4: memref<1024x256xi8, #tpu.memory_space<vmem>>, %arg5: memref<512x384xbf16, #tpu.memory_space<vmem>>, %arg6: memref<256x128xbf16, #tpu.memory_space<vmem>>, %arg7: memref<256x128xbf16, #tpu.memory_space<vmem>>, %arg8: memref<2x256xf32, #tpu.memory_space<vmem>>, %arg9: memref<1x384xf32, #tpu.memory_space<vmem>>, %arg10: memref<2x128xf32, #tpu.memory_space<vmem>>, %arg11: memref<8x128xf32, #tpu.memory_space<vmem>>) attributes {dimension_semantics = [#tpu.dimension_semantics<parallel>], iteration_bounds = array<i64: 1>, scalar_prefetch = 0 : i64, scratch_operands = 0 : i64, tpu.core_type = #tpu.core_type<tc>, window_params = [{transform_indices = @transform_0, window_bounds = array<i64: 8, 1024>}, {transform_indices = @transform_1, window_bounds = array<i64: 8, 1024>}, {pipeline_mode = #tpu.pipeline_mode<synchronous>, transform_indices = @transform_2, window_bounds = array<i64: 1024, 256>}, {pipeline_mode = #tpu.pipeline_mode<synchronous>, transform_indices = @transform_3, window_bounds = array<i64: 1024, 256>}, {pipeline_mode = #tpu.pipeline_mode<synchronous>, transform_indices = @transform_4, window_bounds = array<i64: 512, 384>}, {pipeline_mode = #tpu.pipeline_mode<synchronous>, transform_indices = @transform_5, window_bounds = array<i64: 256, 128>}, {pipeline_mode = #tpu.pipeline_mode<synchronous>, transform_indices = @transform_6, window_bounds = array<i64: 256, 128>}, {pipeline_mode = #tpu.pipeline_mode<synchronous>, transform_indices = @transform_7, window_bounds = array<i64: 2, 256>}, {pipeline_mode = #tpu.pipeline_mode<synchronous>, transform_indices = @transform_8, window_bounds = array<i64: 1, 384>}, {pipeline_mode = #tpu.pipeline_mode<synchronous>, transform_indices = @transform_9, window_bounds = array<i64: 2, 128>}, {transform_indices = @transform_10, window_bounds = array<i64: 8, 128>}]} {
    %c0 = arith.constant 0 : index
    %c0_0 = arith.constant 0 : index
    %0 = vector.load %arg1[%c0, %c0_0] : memref<8x1024xf32, #tpu.memory_space<vmem>>, vector<8x1024xf32>
    %1 = arith.truncf %0 : vector<8x1024xf32> to vector<8x1024xbf16>
    %c0_1 = arith.constant 0 : index
    %c0_2 = arith.constant 0 : index
    %2 = vector.load %arg2[%c0_1, %c0_2] : memref<8x1024xf32, #tpu.memory_space<vmem>>, vector<8x1024xf32>
    %3 = arith.truncf %2 : vector<8x1024xf32> to vector<8x1024xbf16>
    %c0_3 = arith.constant 0 : index
    %c0_4 = arith.constant 0 : index
    %4 = vector.load %arg3[%c0_3, %c0_4] : memref<1024x256xi8, #tpu.memory_space<vmem>>, vector<1024x256xi8>
    %5 = arith.sitofp %4 : vector<1024x256xi8> to vector<1024x256xf32>
    %6 = arith.truncf %5 : vector<1024x256xf32> to vector<1024x256xbf16>
    %c0_5 = arith.constant 0 : index
    %c0_6 = arith.constant 0 : index
    %7 = vector.load %arg4[%c0_5, %c0_6] : memref<1024x256xi8, #tpu.memory_space<vmem>>, vector<1024x256xi8>
    %8 = arith.sitofp %7 : vector<1024x256xi8> to vector<1024x256xf32>
    %9 = arith.truncf %8 : vector<1024x256xf32> to vector<1024x256xbf16>
    %cst = arith.constant dense<0.000000e+00> : vector<8x256xf32>
    %10 = tpu.matmul %1, %6, %cst {dimension_numbers = #tpu.dot_dimension_numbers<[1], [0], [0], [1], [0, 0, 1, 1], [], []>} : vector<8x1024xbf16>, vector<1024x256xbf16>, vector<8x256xf32> -> vector<8x256xf32>
    %c0_7 = arith.constant 0 : index
    %c0_8 = arith.constant 0 : index
    %11 = vector.load %arg8[%c0_7, %c0_8] : memref<2x256xf32, #tpu.memory_space<vmem>>, vector<1x256xf32>
    %12 = vector.broadcast %11 : vector<1x256xf32> to vector<8x256xf32>
    %13 = arith.addf %10, %12 : vector<8x256xf32>
    %cst_9 = arith.constant 0.000000e+00 : f32
    %14 = vector.broadcast %cst_9 : f32 to vector<8x256xf32>
    %15 = arith.maximumf %13, %14 : vector<8x256xf32>
    %cst_10 = arith.constant dense<0.000000e+00> : vector<8x256xf32>
    %16 = tpu.matmul %3, %9, %cst_10 {dimension_numbers = #tpu.dot_dimension_numbers<[1], [0], [0], [1], [0, 0, 1, 1], [], []>} : vector<8x1024xbf16>, vector<1024x256xbf16>, vector<8x256xf32> -> vector<8x256xf32>
    %c1 = arith.constant 1 : index
    %c0_11 = arith.constant 0 : index
    %17 = vector.load %arg8[%c1, %c0_11] : memref<2x256xf32, #tpu.memory_space<vmem>>, vector<1x256xf32>
    %18 = vector.broadcast %17 : vector<1x256xf32> to vector<8x256xf32>
    %19 = arith.addf %16, %18 : vector<8x256xf32>
    %cst_12 = arith.constant 0.000000e+00 : f32
    %20 = vector.broadcast %cst_12 : f32 to vector<8x256xf32>
    %21 = arith.maximumf %19, %20 : vector<8x256xf32>
    %22 = arith.truncf %15 : vector<8x256xf32> to vector<8x256xbf16>
    %23 = arith.truncf %21 : vector<8x256xf32> to vector<8x256xbf16>
    %c0_13 = arith.constant 0 : index
    %c0_14 = arith.constant 0 : index
    %24 = vector.load %arg5[%c0_13, %c0_14] : memref<512x384xbf16, #tpu.memory_space<vmem>>, vector<256x384xbf16>
    %cst_15 = arith.constant dense<0.000000e+00> : vector<8x384xf32>
    %25 = tpu.matmul %22, %24, %cst_15 {dimension_numbers = #tpu.dot_dimension_numbers<[1], [0], [0], [1], [0, 0, 1, 1], [], []>} : vector<8x256xbf16>, vector<256x384xbf16>, vector<8x384xf32> -> vector<8x384xf32>
    %c256 = arith.constant 256 : index
    %c0_16 = arith.constant 0 : index
    %26 = vector.load %arg5[%c256, %c0_16] : memref<512x384xbf16, #tpu.memory_space<vmem>>, vector<256x384xbf16>
    %cst_17 = arith.constant dense<0.000000e+00> : vector<8x384xf32>
    %27 = tpu.matmul %23, %26, %cst_17 {dimension_numbers = #tpu.dot_dimension_numbers<[1], [0], [0], [1], [0, 0, 1, 1], [], []>} : vector<8x256xbf16>, vector<256x384xbf16>, vector<8x384xf32> -> vector<8x384xf32>
    %28 = arith.addf %25, %27 : vector<8x384xf32>
    %c0_18 = arith.constant 0 : index
    %c0_19 = arith.constant 0 : index
    %29 = vector.load %arg9[%c0_18, %c0_19] : memref<1x384xf32, #tpu.memory_space<vmem>>, vector<1x384xf32>
    %30 = vector.broadcast %29 : vector<1x384xf32> to vector<8x384xf32>
    %31 = arith.addf %28, %30 : vector<8x384xf32>
    %cst_20 = arith.constant 0.000000e+00 : f32
    %32 = vector.broadcast %cst_20 : f32 to vector<8x384xf32>
    %33 = arith.maximumf %31, %32 : vector<8x384xf32>
    %34 = vector.extract_strided_slice %33 {offsets = [0, 0], sizes = [8, 256], strides = [1, 1]} : vector<8x384xf32> to vector<8x256xf32>
    %35 = arith.truncf %34 : vector<8x256xf32> to vector<8x256xbf16>
    %36 = vector.extract_strided_slice %33 {offsets = [0, 256], sizes = [8, 128], strides = [1, 1]} : vector<8x384xf32> to vector<8x128xf32>
    %37 = arith.truncf %36 : vector<8x128xf32> to vector<8x128xbf16>
    %c0_21 = arith.constant 0 : index
    %c0_22 = arith.constant 0 : index
    %38 = vector.load %arg6[%c0_21, %c0_22] : memref<256x128xbf16, #tpu.memory_space<vmem>>, vector<256x128xbf16>
    %cst_23 = arith.constant dense<0.000000e+00> : vector<8x128xf32>
    %39 = tpu.matmul %35, %38, %cst_23 {dimension_numbers = #tpu.dot_dimension_numbers<[1], [0], [0], [1], [0, 0, 1, 1], [], []>} : vector<8x256xbf16>, vector<256x128xbf16>, vector<8x128xf32> -> vector<8x128xf32>
    %c0_24 = arith.constant 0 : index
    %c0_25 = arith.constant 0 : index
    %40 = vector.load %arg10[%c0_24, %c0_25] : memref<2x128xf32, #tpu.memory_space<vmem>>, vector<1x128xf32>
    %41 = vector.broadcast %40 : vector<1x128xf32> to vector<8x128xf32>
    %42 = arith.addf %39, %41 : vector<8x128xf32>
    %cst_26 = arith.constant 0.000000e+00 : f32
    %43 = vector.broadcast %cst_26 : f32 to vector<8x128xf32>
    %44 = arith.maximumf %42, %43 : vector<8x128xf32>
    %45 = arith.truncf %44 : vector<8x128xf32> to vector<8x128xbf16>
    %c0_27 = arith.constant 0 : index
    %c0_28 = arith.constant 0 : index
    %46 = vector.load %arg7[%c0_27, %c0_28] : memref<256x128xbf16, #tpu.memory_space<vmem>>, vector<128x128xbf16>
    %cst_29 = arith.constant dense<0.000000e+00> : vector<8x128xf32>
    %47 = tpu.matmul %45, %46, %cst_29 {dimension_numbers = #tpu.dot_dimension_numbers<[1], [0], [0], [1], [0, 0, 1, 1], [], []>} : vector<8x128xbf16>, vector<128x128xbf16>, vector<8x128xf32> -> vector<8x128xf32>
    %c128 = arith.constant 128 : index
    %c0_30 = arith.constant 0 : index
    %48 = vector.load %arg7[%c128, %c0_30] : memref<256x128xbf16, #tpu.memory_space<vmem>>, vector<128x128xbf16>
    %cst_31 = arith.constant dense<0.000000e+00> : vector<8x128xf32>
    %49 = tpu.matmul %37, %48, %cst_31 {dimension_numbers = #tpu.dot_dimension_numbers<[1], [0], [0], [1], [0, 0, 1, 1], [], []>} : vector<8x128xbf16>, vector<128x128xbf16>, vector<8x128xf32> -> vector<8x128xf32>
    %50 = arith.addf %47, %49 : vector<8x128xf32>
    %c1_32 = arith.constant 1 : index
    %c0_33 = arith.constant 0 : index
    %51 = vector.load %arg10[%c1_32, %c0_33] : memref<2x128xf32, #tpu.memory_space<vmem>>, vector<1x128xf32>
    %52 = vector.broadcast %51 : vector<1x128xf32> to vector<8x128xf32>
    %53 = arith.addf %50, %52 : vector<8x128xf32>
    %54 = tpu.iota {dimensions = array<i32: 1>} : vector<8x128xi32>
    %55 = vector.extract_strided_slice %53 {offsets = [0, 0], sizes = [8, 1], strides = [1, 1]} : vector<8x128xf32> to vector<8x1xf32>
    %56 = arith.negf %55 : vector<8x1xf32>
    %57 = math.exp %56 : vector<8x1xf32>
    %cst_34 = arith.constant 1.000000e+00 : f32
    %58 = vector.broadcast %cst_34 : f32 to vector<8x1xf32>
    %59 = arith.addf %58, %57 : vector<8x1xf32>
    %60 = arith.divf %58, %59 : vector<8x1xf32>
    %c0_i32 = arith.constant 0 : i32
    %61 = vector.broadcast %c0_i32 : i32 to vector<8x128xi32>
    %62 = arith.cmpi eq, %54, %61 : vector<8x128xi32>
    %63 = vector.shape_cast %60 : vector<8x1xf32> to vector<8x1xf32>
    %64 = vector.broadcast %63 : vector<8x1xf32> to vector<8x128xf32>
    %65 = arith.select %62, %64, %53 : vector<8x128xi1>, vector<8x128xf32>
    %c0_35 = arith.constant 0 : index
    %c0_36 = arith.constant 0 : index
    %66 = vector.load %arg11[%c0_35, %c0_36] : memref<8x128xf32, #tpu.memory_space<vmem>>, vector<8x128xf32>
    tpu.vector_store %arg11[%c0_35, %c0_36], %65 {strides = array<i32>} : memref<8x128xf32, #tpu.memory_space<vmem>>, vector<8x128xf32>,
    return
  }
  func.func @transform_0(%arg0: i32) -> (i32, i32) {
    %c0_i32 = arith.constant 0 : i32
    %c0_i32_0 = arith.constant 0 : i32
    return %arg0, %c0_i32 : i32, i32
  }
  func.func @transform_1(%arg0: i32) -> (i32, i32) {
    %c0_i32 = arith.constant 0 : i32
    %c0_i32_0 = arith.constant 0 : i32
    return %arg0, %c0_i32 : i32, i32
  }
  func.func @transform_2(%arg0: i32) -> (i32, i32) {
    %c0_i32 = arith.constant 0 : i32
    %c0_i32_0 = arith.constant 0 : i32
    %c0_i32_1 = arith.constant 0 : i32
    return %c0_i32, %c0_i32_0 : i32, i32
  }
  func.func @transform_3(%arg0: i32) -> (i32, i32) {
    %c0_i32 = arith.constant 0 : i32
    %c0_i32_0 = arith.constant 0 : i32
    %c0_i32_1 = arith.constant 0 : i32
    return %c0_i32, %c0_i32_0 : i32, i32
  }
  func.func @transform_4(%arg0: i32) -> (i32, i32) {
    %c0_i32 = arith.constant 0 : i32
    %c0_i32_0 = arith.constant 0 : i32
    %c0_i32_1 = arith.constant 0 : i32
    return %c0_i32, %c0_i32_0 : i32, i32
  }
  func.func @transform_5(%arg0: i32) -> (i32, i32) {
    %c0_i32 = arith.constant 0 : i32
    %c0_i32_0 = arith.constant 0 : i32
    %c0_i32_1 = arith.constant 0 : i32
    return %c0_i32, %c0_i32_0 : i32, i32
  }
  func.func @transform_6(%arg0: i32) -> (i32, i32) {
    %c0_i32 = arith.constant 0 : i32
    %c0_i32_0 = arith.constant 0 : i32
    %c0_i32_1 = arith.constant 0 : i32
    return %c0_i32, %c0_i32_0 : i32, i32
  }
  func.func @transform_7(%arg0: i32) -> (i32, i32) {
    %c0_i32 = arith.constant 0 : i32
    %c0_i32_0 = arith.constant 0 : i32
    %c0_i32_1 = arith.constant 0 : i32
    return %c0_i32, %c0_i32_0 : i32, i32
  }
  func.func @transform_8(%arg0: i32) -> (i32, i32) {
    %c0_i32 = arith.constant 0 : i32
    %c0_i32_0 = arith.constant 0 : i32
    %c0_i32_1 = arith.constant 0 : i32
    return %c0_i32, %c0_i32_0 : i32, i32
  }
  func.func @transform_9(%arg0: i32) -> (i32, i32) {
    %c0_i32 = arith.constant 0 : i32
    %c0_i32_0 = arith.constant 0 : i32
    %c0_i32_1 = arith.constant 0 : i32
    return %c0_i32, %c0_i32_0 : i32, i32
  }
  func.func @transform_10(%arg0: i32) -> (i32, i32) {
    %c0_i32 = arith.constant 0 : i32
    %c0_i32_0 = arith.constant 0 : i32
    return %arg0, %c0_i32 : i32, i32
  }
}

</mosaic_0001>

<bundles_post_ra>
// kernel: binary_choice_classifier.1
= control target key start
LH: loop header
LB: loop body
LE: loop exit
PB: predicated region body
PF: predicated region fallthrough
CT: control target
= control target key end

     0   :  { %15 = vsyncpa [#allocation3], 0  ;;  %s3001_s0 = inlined_call_operand.hbm [shape: f32[8,1024], index: 0, kind: input, shape index: {}]   ;;  %s3002_s1 = inlined_call_operand.hbm [shape: f32[8,1024], index: 1, kind: input, shape index: {}]   ;;  %s3003_s2 = inlined_call_operand.hbm [shape: s8[1024,256], index: 2, kind: input, shape index: {}]   ;;  %s3004_s3 = inlined_call_operand.hbm [shape: s8[1024,256], index: 3, kind: input, shape index: {}]   ;;  %s3005_s4 = inlined_call_operand.hbm [shape: bf16[512,384], index: 4, kind: input, shape index: {}]   ;;  %s3006_s5 = inlined_call_operand.hbm [shape: bf16[256,128], index: 5, kind: input, shape index: {}]   ;;  %s3007_s6 = inlined_call_operand.hbm [shape: bf16[256,128], index: 6, kind: input, shape index: {}]   ;;  %s3008_s7 = inlined_call_operand.vmem [shape: f32[2,256], index: 7, kind: input, shape index: {}]   ;;  %s3009_s8 = inlined_call_operand.vmem [shape: f32[1,384], index: 8, kind: input, shape index: {}]   ;;  %s3010_s9 = inlined_call_operand.vmem [shape: f32[2,128], index: 9, kind: input, shape index: {}]   ;;  %s3011_s10 = inlined_call_operand.vmem [shape: f32[8,128], index: 10, kind: output, shape index: {}]  }
   0x1   :  { %16 = vsyncpa [#allocation5], 0 }
   0x2   :  { %17 = vsyncpa [#allocation8], 0 }
   0x3   :  { %18 = vsyncpa [#allocation11], 0  ;;  %s2772_s13 = smov [#allocation4]   ;;  %s2610_s17 = scalar_lea.hbm %s3002_s1, 1024 }
   0x4   :  { %s35_s14 = sshll.u32 %s2772_s13, 4  ;;  %p2611_p0 = scmp.ne.s32.totalorder %s3002_s1, %s2610_s17  ;;  %s36_s14 = int_to_ptr.vmem [resolvable:$true] %s35_s14 }
   0x5   :  { %p2614_p1 = scmp.lt.u32.totalorder %s2610_s17, %s3002_s1 }
   0x7   :  { %p2616_p2 = pnand %p2614_p1, %p2611_p0 }
   0x9   :  { %2619 = shalt.err (!%p2616_p2)
}
   0xa   :  { %s2620_s22 = scalar_lea.vmem %s36_s14, 1024  ;;  %p2625_p4 = scmp.lt.s32.totalorder %s36_s14, %s36_s14 }
   0xb   :  { %p2621_p3 = scmp.ne.s32.totalorder %s36_s14, %s2620_s22  ;;  %p2626_p5 = scmp.lt.s32.totalorder %s2620_s22, %s2620_s22 }
   0xd   :  { %p2627_p6 = por %p2626_p5, %p2625_p4 }
   0xf   :  { %p2628_p7 = pnand %p2627_p6, %p2621_p3 }
  0x11   :  { %2631 = shalt.err (!%p2628_p7)
}
  0x12   :  { %38 = dma.hbm_to_vmem [thread:$0]  %s3002_s1, 1024, %s36_s14, [#allocation5]  }
  0x13   :  { %s2773_s25 = smov [#allocation7]   ;;  %s2774_s27 = smov [#allocation10]  }
  0x14   :  { %s56_s26 = sshll.u32 %s2773_s25, 4  ;;  %s80_s28 = sshll.u32 %s2774_s27, 4  ;;  %s57_s26 = int_to_ptr.vmem [resolvable:$true] %s56_s26  ;;  %s81_s28 = int_to_ptr.vmem [resolvable:$true] %s80_s28 }
  0x15   :  { %s2632_s11 = scalar_lea.hbm %s3004_s3, 8192 }
  0x16   :  { %p2633_p8 = scmp.ne.s32.totalorder %s3004_s3, %s2632_s11  ;;  %p2636_p9 = scmp.lt.u32.totalorder %s2632_s11, %s3004_s3 }
  0x18   :  { %p2638_p10 = pnand %p2636_p9, %p2633_p8 }
  0x1a   :  { %2641 = shalt.err (!%p2638_p10)
}
  0x1b   :  { %s2642_s1 = scalar_lea.vmem %s57_s26, 8192  ;;  %p2647_p12 = scmp.lt.s32.totalorder %s57_s26, %s57_s26 }
  0x1c   :  { %p2643_p11 = scmp.ne.s32.totalorder %s57_s26, %s2642_s1  ;;  %p2648_p13 = scmp.lt.s32.totalorder %s2642_s1, %s2642_s1 }
  0x1e   :  { %p2649_p0 = por %p2648_p13, %p2647_p12 }
  0x20   :  { %p2650_p1 = pnand %p2649_p0, %p2643_p11 }
  0x22   :  { %2653 = shalt.err (!%p2650_p1)
}
  0x23   :  { %s2775_s14 = smov 256   ;;  %s2776_s17 = smov 16  }
  0x24   :  { %62 = dma.hbm_to_vmem [thread:$0]  %s3004_s3, 8192, %s57_s26, [#allocation8], %s2775_s14, %s2775_s14, %s2776_s17  }
  0x25   :  { %s2654_s22 = scalar_lea.hbm %s3006_s5, 2048 }
  0x26   :  { %p2655_p2 = scmp.ne.s32.totalorder %s3006_s5, %s2654_s22  ;;  %p2658_p3 = scmp.lt.u32.totalorder %s2654_s22, %s3006_s5 }
  0x28   :  { %p2660_p4 = pnand %p2658_p3, %p2655_p2 }
  0x2a   :  { %2663 = shalt.err (!%p2660_p4)
}
  0x2b   :  { %s2664_s29 = scalar_lea.vmem %s81_s28, 2048  ;;  %p2669_p6 = scmp.lt.s32.totalorder %s81_s28, %s81_s28 }
  0x2c   :  { %p2665_p5 = scmp.ne.s32.totalorder %s81_s28, %s2664_s29  ;;  %p2670_p7 = scmp.lt.s32.totalorder %s2664_s29, %s2664_s29 }
  0x2e   :  { %p2671_p8 = por %p2670_p7, %p2669_p6 }
  0x30   :  { %p2672_p9 = pnand %p2671_p8, %p2665_p5 }
  0x32   :  { %2675 = shalt.err (!%p2672_p9)
}
  0x33   :  { %s2777_s3 = smov 64   ;;  %s2778_s26 = smov 4  }
  0x34   :  { %86 = dma.hbm_to_vmem [thread:$0]  %s3006_s5, 2048, %s81_s28, [#allocation11], %s2777_s3, %s2777_s3, %s2778_s26  }
  0x35   :  { %s2779_s12 = smov [#allocation2]   ;;  %s2780_s15 = smov [#allocation6]  }
  0x36   :  { %s25_s13 = sshll.u32 %s2779_s12, 4  ;;  %s44_s16 = sshll.u32 %s2780_s15, 4  ;;  %s26_s13 = int_to_ptr.vmem [resolvable:$true] %s25_s13  ;;  %s45_s16 = int_to_ptr.vmem [resolvable:$true] %s44_s16 }
  0x37   :  { %s2676_s19 = scalar_lea.hbm %s3001_s0, 1024 }
  0x38   :  { %p2677_p10 = scmp.ne.s32.totalorder %s3001_s0, %s2676_s19  ;;  %p2680_p11 = scmp.lt.u32.totalorder %s2676_s19, %s3001_s0 }
  0x3a   :  { %p2682_p12 = pnand %p2680_p11, %p2677_p10 }
  0x3c   :  { %2685 = shalt.err (!%p2682_p12)
}
  0x3d   :  { %s2686_s5 = scalar_lea.vmem %s26_s13, 1024  ;;  %p2691_p0 = scmp.lt.s32.totalorder %s26_s13, %s26_s13 }
  0x3e   :  { %p2687_p13 = scmp.ne.s32.totalorder %s26_s13, %s2686_s5  ;;  %p2692_p1 = scmp.lt.s32.totalorder %s2686_s5, %s2686_s5 }
  0x40   :  { %p2693_p2 = por %p2692_p1, %p2691_p0 }
  0x42   :  { %p2694_p3 = pnand %p2693_p2, %p2687_p13 }
  0x44   :  { %2697 = shalt.err (!%p2694_p3)
}
  0x45   :  { %28 = dma.hbm_to_vmem [thread:$0]  %s3001_s0, 1024, %s26_s13, [#allocation3]  }
  0x46   :  { %s2698_s29 = scalar_lea.hbm %s3003_s2, 8192 }
  0x47   :  { %p2699_p4 = scmp.ne.s32.totalorder %s3003_s2, %s2698_s29  ;;  %p2702_p5 = scmp.lt.u32.totalorder %s2698_s29, %s3003_s2 }
  0x49   :  { %p2704_p6 = pnand %p2702_p5, %p2699_p4 }
  0x4b   :  { %2707 = shalt.err (!%p2704_p6)
}
  0x4c   :  { %s2708_s1 = scalar_lea.vmem %s45_s16, 8192  ;;  %p2713_p8 = scmp.lt.s32.totalorder %s45_s16, %s45_s16 }
  0x4d   :  { %p2709_p7 = scmp.ne.s32.totalorder %s45_s16, %s2708_s1  ;;  %p2714_p9 = scmp.lt.s32.totalorder %s2708_s1, %s2708_s1 }
  0x4f   :  { %p2715_p10 = por %p2714_p9, %p2713_p8 }
  0x51   :  { %p2716_p11 = pnand %p2715_p10, %p2709_p7 }
  0x53   :  { %2719 = shalt.err (!%p2716_p11)
}
  0x54   :  { %50 = dma.hbm_to_vmem [thread:$0]  %s3003_s2, 8192, %s45_s16, [#allocation5], %s2775_s14, %s2775_s14, %s2776_s17  }
  0x55   :  { %s2781_s18 = smov [#allocation9]   ;;  %s2720_s22 = scalar_lea.hbm %s3005_s4, 12288 }
  0x56   :  { %s68_s19 = sshll.u32 %s2781_s18, 4  ;;  %p2721_p12 = scmp.ne.s32.totalorder %s3005_s4, %s2720_s22  ;;  %s69_s19 = int_to_ptr.vmem [resolvable:$true] %s68_s19 }
  0x57   :  { %p2724_p13 = scmp.lt.u32.totalorder %s2720_s22, %s3005_s4 }
  0x59   :  { %p2726_p0 = pnand %p2724_p13, %p2721_p12 }
  0x5b   :  { %2729 = shalt.err (!%p2726_p0)
}
  0x5c   :  { %s2730_s25 = scalar_lea.vmem %s69_s19, 12288  ;;  %p2735_p2 = scmp.lt.s32.totalorder %s69_s19, %s69_s19 }
  0x5d   :  { %p2731_p1 = scmp.ne.s32.totalorder %s69_s19, %s2730_s25  ;;  %p2736_p3 = scmp.lt.s32.totalorder %s2730_s25, %s2730_s25 }
  0x5f   :  { %p2737_p4 = por %p2736_p3, %p2735_p2 }
  0x61   :  { %p2738_p5 = pnand %p2737_p4, %p2731_p1 }
  0x63   :  { %2741 = shalt.err (!%p2738_p5)
}
  0x64   :  { %s2782_s2 = smov 192   ;;  %s2783_s14 = smov 12  }
  0x65   :  { %74 = dma.hbm_to_vmem [thread:$0]  %s3005_s4, 12288, %s69_s19, [#allocation8], %s2782_s2, %s2782_s2, %s2783_s14  }
  0x66   :  { %s2784_s27 = smov [#allocation12]   ;;  %s2742_s12 = scalar_lea.hbm %s3007_s6, 2048 }
  0x67   :  { %s92_s29 = sshll.u32 %s2784_s27, 4  ;;  %p2743_p6 = scmp.ne.s32.totalorder %s3007_s6, %s2742_s12  ;;  %s93_s29 = int_to_ptr.vmem [resolvable:$true] %s92_s29 }
  0x68   :  { %p2746_p7 = scmp.lt.u32.totalorder %s2742_s12, %s3007_s6 }
  0x6a   :  { %p2748_p8 = pnand %p2746_p7, %p2743_p6 }
  0x6c   :  { %2751 = shalt.err (!%p2748_p8)
}
  0x6d   :  { %s2752_s18 = scalar_lea.vmem %s93_s29, 2048  ;;  %p2757_p10 = scmp.lt.s32.totalorder %s93_s29, %s93_s29 }
  0x6e   :  { %p2753_p9 = scmp.ne.s32.totalorder %s93_s29, %s2752_s18  ;;  %p2758_p11 = scmp.lt.s32.totalorder %s2752_s18, %s2752_s18 }
  0x70   :  { %p2759_p12 = por %p2758_p11, %p2757_p10 }
  0x72   :  { %p2760_p13 = pnand %p2759_p12, %p2753_p9 }
  0x74   :  { %2763 = shalt.err (!%p2760_p13)
}
  0x75   :  { %98 = dma.hbm_to_vmem [thread:$0]  %s3007_s6, 2048, %s93_s29, [#allocation11], %s2777_s3, %s2777_s3, %s2778_s26  }
  0x76   :  { %2764 = dma.done.wait [#allocation3], 1024  }
  0x77   :  { %2765 = vsyncadd [#allocation3], 4294966272 }
  0x78   :  { %2766 = dma.done.wait [#allocation5], 9216  }
  0x79   :  { %2767 = vsyncadd [#allocation5], 4294958080 }
  0x7a   :  { %2768 = dma.done.wait [#allocation8], 20480  }
  0x7b   :  { %2769 = vsyncadd [#allocation8], 4294946816 }
  0x7c   :  { %2770 = dma.done.wait [#allocation11], 4096  }
  0x7d   :  { %2771 = vsyncadd [#allocation11], 4294963200  ;;  %v160_v0 = vld [vmem:[#allocation6 + $0x8] sm:$0xff]  ;;  %v159_v2 = vld [vmem:[#allocation6] sm:$0xff]  ;;  %vm2786_vm0 = vmmov 0  }
  0x7e   :  { %v352_v1 = vld [vmem:[#allocation7 + $0x8] sm:$0xff]  ;;  %v224_v3 = vunpack.c.l.s8.bf16 %v160_v0  ;;  %v226_v4 = vunpack.c.h.s8.bf16 %v160_v0  ;;  %v351_v7 = vld [vmem:[#allocation7] sm:$0xff]  ;;  %v223_v8 = vunpack.c.l.s8.bf16 %v159_v2  ;;  %v162_v10 = vld [vmem:[#allocation6 + $0x18] sm:$0xff]  ;;  %v225_v12 = vunpack.c.h.s8.bf16 %v159_v2 }
  0x7f   :  { %v416_v5 = vunpack.c.l.s8.bf16 %v352_v1  ;;  %v418_v6 = vunpack.c.h.s8.bf16 %v352_v1  ;;  %v415_v9 = vunpack.c.l.s8.bf16 %v351_v7  ;;  %v354_v11 = vld [vmem:[#allocation7 + $0x18] sm:$0xff]  ;;  %v417_v13 = vunpack.c.h.s8.bf16 %v351_v7  ;;  %v161_v16 = vld [vmem:[#allocation6 + $0x10] sm:$0xff]  ;;  %v164_v22 = vld [vmem:[#allocation6 + $0x28] sm:$0xff] }
  0x80   :  { %555 = vmatprep.subr.bf16.mxu0 %v224_v3  ;;  %v228_v14 = vunpack.c.l.s8.bf16 %v162_v10  ;;  %v420_v15 = vunpack.c.l.s8.bf16 %v354_v11  ;;  %v353_v17 = vld [vmem:[#allocation7 + $0x10] sm:$0xff]  ;;  %v227_v18 = vunpack.c.l.s8.bf16 %v161_v16  ;;  %v230_v20 = vunpack.c.h.s8.bf16 %v162_v10  ;;  %v356_v23 = vld [vmem:[#allocation7 + $0x28] sm:$0xff]  ;;  %v163_v28 = vld [vmem:[#allocation6 + $0x20] sm:$0xff] }
  0x81   :  { %734 = vmatprep.subr.bf16.mxu1 %v416_v5  ;;  %556 = vmatpush1.bf16.msra.mxu0 %v223_v8  ;;  %v419_v19 = vunpack.c.l.s8.bf16 %v353_v17  ;;  %v422_v21 = vunpack.c.h.s8.bf16 %v354_v11  ;;  %v229_v24 = vunpack.c.h.s8.bf16 %v161_v16  ;;  %v421_v25 = vunpack.c.h.s8.bf16 %v353_v17  ;;  %v355_v29 = vld [vmem:[#allocation7 + $0x20] sm:$0xff]  ;;  %v128_v30 = vld [vmem:[#allocation2 + $0x8] sm:$0xff]  ;;  %v166_v38 = vld [vmem:[#allocation6 + $0x38] sm:$0xff] }
  0x82   :  { %735 = vmatpush1.bf16.msra.mxu1 %v415_v9  ;;  %557 = vmatprep.subr.bf16.mxu0 %v226_v4  ;;  %v232_v26 = vunpack.c.l.s8.bf16 %v164_v22  ;;  %v424_v27 = vunpack.c.l.s8.bf16 %v356_v23  ;;  %v144_v31 = vld [vmem:[#allocation4 + $0x8] sm:$0xff]  ;;  %v231_v32 = vunpack.c.l.s8.bf16 %v163_v28  ;;  %v423_v33 = vunpack.c.l.s8.bf16 %v355_v29  ;;  %v358_v39 = vld [vmem:[#allocation7 + $0x38] sm:$0xff]  ;;  %v165_v44 = vld [vmem:[#allocation6 + $0x30] sm:$0xff] }
  0x83   :  { %736 = vmatprep.subr.bf16.mxu1 %v418_v6  ;;  %v234_v34 = vunpack.c.h.s8.bf16 %v164_v22  ;;  %v426_v35 = vunpack.c.h.s8.bf16 %v356_v23  ;;  %v136_v36 = vpack.c.bf16 %v128_v30, %v128_v30  ;;  %v152_v37 = vpack.c.bf16 %v144_v31, %v144_v31  ;;  %v357_v45 = vld [vmem:[#allocation7 + $0x30] sm:$0xff]  ;;  %v168_v50 = vld [vmem:[#allocation6 + $0x48] sm:$0xff]  ;;  %v167_v54 = vld [vmem:[#allocation6 + $0x40] sm:$0xff] }
  0x84   :  { %v233_v40 = vunpack.c.h.s8.bf16 %v163_v28  ;;  %v425_v41 = vunpack.c.h.s8.bf16 %v355_v29  ;;  %v236_v42 = vunpack.c.l.s8.bf16 %v166_v38  ;;  %v428_v43 = vunpack.c.l.s8.bf16 %v358_v39  ;;  %v360_v51 = vld [vmem:[#allocation7 + $0x48] sm:$0xff]  ;;  %v359_v57 = vld [vmem:[#allocation7 + $0x40] sm:$0xff]  ;;  %v170_v62 = vld [vmem:[#allocation6 + $0x58] sm:$0xff] }
  0x85   :  { %558 = vmatpush1.bf16.msra.mxu0 %v225_v12  ;;  %587 = vmatprep.mubr.bf16.mxu0 %v136_v36  ;;  %v235_v46 = vunpack.c.l.s8.bf16 %v165_v44  ;;  %v427_v47 = vunpack.c.l.s8.bf16 %v357_v45  ;;  %v238_v48 = vunpack.c.h.s8.bf16 %v166_v38  ;;  %v430_v49 = vunpack.c.h.s8.bf16 %v358_v39  ;;  %v362_v63 = vld [vmem:[#allocation7 + $0x58] sm:$0xff]  ;;  %v169_v0 = vld [vmem:[#allocation6 + $0x50] sm:$0xff]  ;;  %v172_v10 = vld [vmem:[#allocation6 + $0x68] sm:$0xff] }
  0x86   :  { %737 = vmatpush1.bf16.msra.mxu1 %v417_v13  ;;  %559 = vmatprep.subr.bf16.mxu0 %v228_v14  ;;  %v237_v52 = vunpack.c.h.s8.bf16 %v165_v44  ;;  %v429_v53 = vunpack.c.h.s8.bf16 %v357_v45  ;;  %v240_v55 = vunpack.c.l.s8.bf16 %v168_v50  ;;  %v432_v56 = vunpack.c.l.s8.bf16 %v360_v51  ;;  %v361_v1 = vld [vmem:[#allocation7 + $0x50] sm:$0xff]  ;;  %v364_v11 = vld [vmem:[#allocation7 + $0x68] sm:$0xff]  ;;  %v171_v12 = vld [vmem:[#allocation6 + $0x60] sm:$0xff] }
  0x87   :  { %738 = vmatprep.subr.bf16.mxu1 %v420_v15  ;;  %766 = vmatprep.mubr.bf16.mxu1 %v152_v37  ;;  %v239_v58 = vunpack.c.l.s8.bf16 %v167_v54  ;;  %v431_v59 = vunpack.c.l.s8.bf16 %v359_v57  ;;  %v242_v60 = vunpack.c.h.s8.bf16 %v168_v50  ;;  %v434_v61 = vunpack.c.h.s8.bf16 %v360_v51  ;;  %v363_v13 = vld [vmem:[#allocation7 + $0x60] sm:$0xff]  ;;  %v174_v22 = vld [vmem:[#allocation6 + $0x78] sm:$0xff] }
  0x88   :  { %v241_v2 = vunpack.c.h.s8.bf16 %v167_v54  ;;  %v433_v3 = vunpack.c.h.s8.bf16 %v359_v57  ;;  %v244_v4 = vunpack.c.l.s8.bf16 %v170_v62  ;;  %v436_v5 = vunpack.c.l.s8.bf16 %v362_v63  ;;  %v366_v23 = vld [vmem:[#allocation7 + $0x78] sm:$0xff]  ;;  %v127_v36 = vld [vmem:[#allocation2] sm:$0xff]  ;;  %v369_v57 = vld [vmem:[#allocation7 + $0x90] sm:$0xff] }
  0x89   :  { %560 = vmatpush1.bf16.msra.mxu0 %v227_v18  ;;  %v243_v6 = vunpack.c.l.s8.bf16 %v169_v0  ;;  %v435_v7 = vunpack.c.l.s8.bf16 %v361_v1  ;;  %v246_v8 = vunpack.c.h.s8.bf16 %v170_v62  ;;  %v438_v9 = vunpack.c.h.s8.bf16 %v362_v63  ;;  %v143_v37 = vld [vmem:[#allocation4] sm:$0xff]  ;;  %v130_v44 = vld [vmem:[#allocation2 + $0x18] sm:$0xff] }
  0x8a   :  { %739 = vmatpush1.bf16.msra.mxu1 %v419_v19  ;;  %561 = vmatprep.subr.bf16.mxu0 %v230_v20  ;;  %v245_v14 = vunpack.c.h.s8.bf16 %v169_v0  ;;  %v437_v15 = vunpack.c.h.s8.bf16 %v361_v1  ;;  %v248_v16 = vunpack.c.l.s8.bf16 %v172_v10  ;;  %v440_v17 = vunpack.c.l.s8.bf16 %v364_v11  ;;  %v175_v38 = vld [vmem:[#allocation6 + $0x80] sm:$0xff]  ;;  %v146_v45 = vld [vmem:[#allocation4 + $0x18] sm:$0xff] }
  0x8b   :  { %740 = vmatprep.subr.bf16.mxu1 %v422_v21  ;;  %v247_v18 = vunpack.c.l.s8.bf16 %v171_v12  ;;  %v439_v19 = vunpack.c.l.s8.bf16 %v363_v13  ;;  %v250_v20 = vunpack.c.h.s8.bf16 %v172_v10  ;;  %v442_v21 = vunpack.c.h.s8.bf16 %v364_v11  ;;  %v367_v39 = vld [vmem:[#allocation7 + $0x80] sm:$0xff] }
  0x8c   :  { %v252_v28 = vunpack.c.l.s8.bf16 %v174_v22  ;;  %v444_v29 = vunpack.c.l.s8.bf16 %v366_v23  ;;  %v138_v54 = vpack.c.bf16 %v130_v44, %v130_v44  ;;  %v451_v63 = vunpack.c.l.s8.bf16 %v369_v57 }
  0x8d   :  { %562 = vmatpush1.bf16.msra.mxu0 %v229_v24  ;;  %v173_v24 = vld [vmem:[#allocation6 + $0x70] sm:$0xff] }
  0x8e   :  { %741 = vmatpush1.bf16.msra.mxu1 %v421_v25  ;;  %563 = vmatprep.subr.bf16.mxu0 %v232_v26  ;;  %v365_v25 = vld [vmem:[#allocation7 + $0x70] sm:$0xff]  ;;  %v249_v26 = vunpack.c.h.s8.bf16 %v171_v12  ;;  %v251_v30 = vunpack.c.l.s8.bf16 %v173_v24 }
  0x8f   :  { %742 = vmatprep.subr.bf16.mxu1 %v424_v27  ;;  %v441_v27 = vunpack.c.h.s8.bf16 %v363_v13  ;;  %v443_v31 = vunpack.c.l.s8.bf16 %v365_v25 }
  0x91   :  { %564 = vmatpush1.bf16.msra.mxu0 %v231_v32  ;;  %v254_v32 = vunpack.c.h.s8.bf16 %v174_v22 }
  0x92   :  { %743 = vmatpush1.bf16.msra.mxu1 %v423_v33  ;;  %565 = vmatprep.subr.bf16.mxu0 %v234_v34  ;;  %v446_v33 = vunpack.c.h.s8.bf16 %v366_v23  ;;  %v176_v34 = vld [vmem:[#allocation6 + $0x88] sm:$0xff] }
  0x93   :  { %744 = vmatprep.subr.bf16.mxu1 %v426_v35  ;;  %v368_v35 = vld [vmem:[#allocation7 + $0x88] sm:$0xff]  ;;  %v258_v50 = vunpack.c.h.s8.bf16 %v176_v34 }
  0x94   :  { %v450_v51 = vunpack.c.h.s8.bf16 %v368_v35 }
  0x95   :  { %566 = vmatpush1.bf16.msra.mxu0 %v233_v40  ;;  %v253_v40 = vunpack.c.h.s8.bf16 %v173_v24 }
  0x96   :  { %745 = vmatpush1.bf16.msra.mxu1 %v425_v41  ;;  %567 = vmatprep.subr.bf16.mxu0 %v236_v42  ;;  %v445_v41 = vunpack.c.h.s8.bf16 %v365_v25  ;;  %v256_v42 = vunpack.c.l.s8.bf16 %v176_v34 }
  0x97   :  { %746 = vmatprep.subr.bf16.mxu1 %v428_v43  ;;  %v448_v43 = vunpack.c.l.s8.bf16 %v368_v35 }
  0x99   :  { %568 = vmatpush1.bf16.msra.mxu0 %v235_v46  ;;  %v135_v46 = vpack.c.bf16 %v127_v36, %v127_v36 }
  0x9a   :  { %747 = vmatpush1.bf16.msra.mxu1 %v427_v47  ;;  %569 = vmatprep.subr.bf16.mxu0 %v238_v48  ;;  %v151_v47 = vpack.c.bf16 %v143_v37, %v143_v37  ;;  %v255_v48 = vunpack.c.l.s8.bf16 %v175_v38 }
  0x9b   :  { %748 = vmatprep.subr.bf16.mxu1 %v430_v49  ;;  %v447_v49 = vunpack.c.l.s8.bf16 %v367_v39 }
  0x9d   :  { %570 = vmatpush1.bf16.msra.mxu0 %v237_v52  ;;  %v178_v52 = vld [vmem:[#allocation6 + $0x98] sm:$0xff] }
  0x9e   :  { %749 = vmatpush1.bf16.msra.mxu1 %v429_v53  ;;  %571 = vmatprep.subr.bf16.mxu0 %v240_v55  ;;  %v370_v53 = vld [vmem:[#allocation7 + $0x98] sm:$0xff]  ;;  %v154_v55 = vpack.c.bf16 %v146_v45, %v146_v45  ;;  %v262_v0 = vunpack.c.h.s8.bf16 %v178_v52 }
  0x9f   :  { %750 = vmatprep.subr.bf16.mxu1 %v432_v56  ;;  %v177_v56 = vld [vmem:[#allocation6 + $0x90] sm:$0xff]  ;;  %v454_v1 = vunpack.c.h.s8.bf16 %v370_v53 }
  0xa0   :  { %v259_v62 = vunpack.c.l.s8.bf16 %v177_v56 }
  0xa1   :  { %572 = vmatpush1.bf16.msra.mxu0 %v239_v58  ;;  %v257_v58 = vunpack.c.h.s8.bf16 %v175_v38  ;;  %v186_v38 = vld [vmem:[#allocation6 + $0xd8] sm:$0xff] }
  0xa2   :  { %751 = vmatpush1.bf16.msra.mxu1 %v431_v59  ;;  %573 = vmatprep.subr.bf16.mxu0 %v242_v60  ;;  %v449_v59 = vunpack.c.h.s8.bf16 %v367_v39  ;;  %v260_v60 = vunpack.c.l.s8.bf16 %v178_v52  ;;  %v378_v39 = vld [vmem:[#allocation7 + $0xd8] sm:$0xff]  ;;  %v276_v44 = vunpack.c.l.s8.bf16 %v186_v38 }
  0xa3   :  { %752 = vmatprep.subr.bf16.mxu1 %v434_v61  ;;  %v452_v61 = vunpack.c.l.s8.bf16 %v370_v53  ;;  %v468_v45 = vunpack.c.l.s8.bf16 %v378_v39 }
  0xa5   :  { %574 = vmatpush1.bf16.msra.mxu0 %v241_v2  ;;  %v180_v2 = vld [vmem:[#allocation6 + $0xa8] sm:$0xff] }
  0xa6   :  { %753 = vmatpush1.bf16.msra.mxu1 %v433_v3  ;;  %575 = vmatprep.subr.bf16.mxu0 %v244_v4  ;;  %v372_v3 = vld [vmem:[#allocation7 + $0xa8] sm:$0xff]  ;;  %v179_v4 = vld [vmem:[#allocation6 + $0xa0] sm:$0xff]  ;;  %v266_v12 = vunpack.c.h.s8.bf16 %v180_v2 }
  0xa7   :  { %754 = vmatprep.subr.bf16.mxu1 %v436_v5  ;;  %v371_v5 = vld [vmem:[#allocation7 + $0xa0] sm:$0xff]  ;;  %v263_v10 = vunpack.c.l.s8.bf16 %v179_v4  ;;  %v458_v13 = vunpack.c.h.s8.bf16 %v372_v3 }
  0xa8   :  { %v455_v11 = vunpack.c.l.s8.bf16 %v371_v5 }
  0xa9   :  { %576 = vmatpush1.bf16.msra.mxu0 %v243_v6  ;;  %v261_v6 = vunpack.c.h.s8.bf16 %v177_v56  ;;  %v187_v56 = vld [vmem:[#allocation6 + $0xe0] sm:$0xff] }
  0xaa   :  { %755 = vmatpush1.bf16.msra.mxu1 %v435_v7  ;;  %577 = vmatprep.subr.bf16.mxu0 %v246_v8  ;;  %v453_v7 = vunpack.c.h.s8.bf16 %v369_v57  ;;  %v264_v8 = vunpack.c.l.s8.bf16 %v180_v2  ;;  %v379_v57 = vld [vmem:[#allocation7 + $0xe0] sm:$0xff] }
  0xab   :  { %756 = vmatprep.subr.bf16.mxu1 %v438_v9  ;;  %v456_v9 = vunpack.c.l.s8.bf16 %v372_v3 }
  0xad   :  { %578 = vmatpush1.bf16.msra.mxu0 %v245_v14  ;;  %v182_v14 = vld [vmem:[#allocation6 + $0xb8] sm:$0xff] }
  0xae   :  { %757 = vmatpush1.bf16.msra.mxu1 %v437_v15  ;;  %579 = vmatprep.subr.bf16.mxu0 %v248_v16  ;;  %v374_v15 = vld [vmem:[#allocation7 + $0xb8] sm:$0xff]  ;;  %v181_v16 = vld [vmem:[#allocation6 + $0xb0] sm:$0xff]  ;;  %v270_v24 = vunpack.c.h.s8.bf16 %v182_v14 }
  0xaf   :  { %758 = vmatprep.subr.bf16.mxu1 %v440_v17  ;;  %v373_v17 = vld [vmem:[#allocation7 + $0xb0] sm:$0xff]  ;;  %v267_v22 = vunpack.c.l.s8.bf16 %v181_v16  ;;  %v462_v25 = vunpack.c.h.s8.bf16 %v374_v15 }
  0xb0   :  { %v459_v23 = vunpack.c.l.s8.bf16 %v373_v17 }
  0xb1   :  { %580 = vmatpush1.bf16.msra.mxu0 %v247_v18  ;;  %v265_v18 = vunpack.c.h.s8.bf16 %v179_v4  ;;  %v189_v4 = vld [vmem:[#allocation6 + $0xf0] sm:$0xff] }
  0xb2   :  { %759 = vmatpush1.bf16.msra.mxu1 %v439_v19  ;;  %581 = vmatprep.subr.bf16.mxu0 %v250_v20  ;;  %v457_v19 = vunpack.c.h.s8.bf16 %v371_v5  ;;  %v268_v20 = vunpack.c.l.s8.bf16 %v182_v14  ;;  %v381_v5 = vld [vmem:[#allocation7 + $0xf0] sm:$0xff] }
  0xb3   :  { %760 = vmatprep.subr.bf16.mxu1 %v442_v21  ;;  %v460_v21 = vunpack.c.l.s8.bf16 %v374_v15  ;;  %v129_v14 = vld [vmem:[#allocation2 + $0x10] sm:$0xff] }
  0xb4   :  { %v145_v15 = vld [vmem:[#allocation4 + $0x10] sm:$0xff] }
  0xb5   :  { %582 = vmatpush1.bf16.msra.mxu0 %v249_v26  ;;  %v184_v26 = vld [vmem:[#allocation6 + $0xc8] sm:$0xff] }
  0xb6   :  { %761 = vmatpush1.bf16.msra.mxu1 %v441_v27  ;;  %583 = vmatprep.subr.bf16.mxu0 %v252_v28  ;;  %v376_v27 = vld [vmem:[#allocation7 + $0xc8] sm:$0xff]  ;;  %v183_v28 = vld [vmem:[#allocation6 + $0xc0] sm:$0xff]  ;;  %v274_v36 = vunpack.c.h.s8.bf16 %v184_v26 }
  0xb7   :  { %762 = vmatprep.subr.bf16.mxu1 %v444_v29  ;;  %v375_v29 = vld [vmem:[#allocation7 + $0xc0] sm:$0xff]  ;;  %v271_v34 = vunpack.c.l.s8.bf16 %v183_v28  ;;  %v466_v37 = vunpack.c.h.s8.bf16 %v376_v27 }
  0xb8   :  { %v463_v35 = vunpack.c.l.s8.bf16 %v375_v29 }
  0xb9   :  { %584 = vmatpush1.bf16.msra.mxu0 %v251_v30  ;;  %v269_v30 = vunpack.c.h.s8.bf16 %v181_v16 }
  0xba   :  { %763 = vmatpush1.bf16.msra.mxu1 %v443_v31  ;;  %585 = vmatprep.subr.bf16.mxu0 %v254_v32  ;;  %v461_v31 = vunpack.c.h.s8.bf16 %v373_v17  ;;  %v272_v32 = vunpack.c.l.s8.bf16 %v184_v26 }
  0xbb   :  { %764 = vmatprep.subr.bf16.mxu1 %v446_v33  ;;  %v464_v33 = vunpack.c.l.s8.bf16 %v376_v27 }
  0xbd   :  { %586 = vmatpush1.bf16.msra.mxu0 %v253_v40  ;;  %v185_v40 = vld [vmem:[#allocation6 + $0xd0] sm:$0xff] }
  0xbe   :  { %765 = vmatpush1.bf16.msra.mxu1 %v445_v41  ;;  %596 = vmatprep.subr.bf16.mxu0 %v256_v42  ;;  %v377_v41 = vld [vmem:[#allocation7 + $0xd0] sm:$0xff]  ;;  %v273_v42 = vunpack.c.h.s8.bf16 %v183_v28  ;;  %v277_v52 = vunpack.c.h.s8.bf16 %v185_v40  ;;  %v194_v28 = vld [vmem:[#allocation6 + $0x118] sm:$0xff] }
  0xbf   :  { %775 = vmatprep.subr.bf16.mxu1 %v448_v43  ;;  %v465_v43 = vunpack.c.h.s8.bf16 %v375_v29  ;;  %v469_v53 = vunpack.c.h.s8.bf16 %v377_v41  ;;  %v386_v29 = vld [vmem:[#allocation7 + $0x118] sm:$0xff] }
  0xc0   :  { %588 = vmatmul.mubr.bf16.vlgmr.msra.gmra.mrb[0].mxu0 %v135_v46  ;;  %v275_v46 = vunpack.c.l.s8.bf16 %v185_v40  ;;  %v294_v40 = vunpack.c.h.s8.bf16 %v194_v28 }
  0xc1   :  { %767 = vmatmul.mubr.bf16.vlgmr.msra.gmra.mrb[0].mxu1 %v151_v47  ;;  %597 = vmatpush1.bf16.msra.mxu0 %v255_v48  ;;  %v467_v47 = vunpack.c.l.s8.bf16 %v377_v41  ;;  %v278_v48 = vunpack.c.h.s8.bf16 %v186_v38  ;;  %v486_v41 = vunpack.c.h.s8.bf16 %v386_v29 }
  0xc2   :  { %776 = vmatpush1.bf16.msra.mxu1 %v447_v49  ;;  %598 = vmatprep.subr.bf16.mxu0 %v258_v50  ;;  %v470_v49 = vunpack.c.h.s8.bf16 %v378_v39  ;;  %v188_v50 = vld [vmem:[#allocation6 + $0xe8] sm:$0xff] }
  0xc3   :  { %777 = vmatprep.subr.bf16.mxu1 %v450_v51  ;;  %628 = vmatprep.mubr.bf16.mxu0 %v138_v54  ;;  %v380_v51 = vld [vmem:[#allocation7 + $0xe8] sm:$0xff]  ;;  %v280_v54 = vunpack.c.l.s8.bf16 %v188_v50 }
  0xc4   :  { %807 = vmatprep.mubr.bf16.mxu1 %v154_v55  ;;  %v472_v55 = vunpack.c.l.s8.bf16 %v380_v51 }
  0xc5   :  { %599 = vmatpush1.bf16.msra.mxu0 %v257_v58  ;;  %v279_v58 = vunpack.c.l.s8.bf16 %v187_v56 }
  0xc6   :  { %778 = vmatpush1.bf16.msra.mxu1 %v449_v59  ;;  %600 = vmatprep.subr.bf16.mxu0 %v260_v60  ;;  %v471_v59 = vunpack.c.l.s8.bf16 %v379_v57  ;;  %v282_v60 = vunpack.c.h.s8.bf16 %v188_v50 }
  0xc7   :  { %779 = vmatprep.subr.bf16.mxu1 %v452_v61  ;;  %v474_v61 = vunpack.c.h.s8.bf16 %v380_v51 }
  0xc9   :  { %601 = vmatpush1.bf16.msra.mxu0 %v259_v62  ;;  %v190_v62 = vld [vmem:[#allocation6 + $0xf8] sm:$0xff] }
  0xca   :  { %780 = vmatpush1.bf16.msra.mxu1 %v451_v63  ;;  %602 = vmatprep.subr.bf16.mxu0 %v262_v0  ;;  %v382_v63 = vld [vmem:[#allocation7 + $0xf8] sm:$0xff]  ;;  %v281_v0 = vunpack.c.h.s8.bf16 %v187_v56  ;;  %v284_v2 = vunpack.c.l.s8.bf16 %v190_v62 }
  0xcb   :  { %781 = vmatprep.subr.bf16.mxu1 %v454_v1  ;;  %v473_v1 = vunpack.c.h.s8.bf16 %v379_v57  ;;  %v476_v3 = vunpack.c.l.s8.bf16 %v382_v63 }
  0xcd   :  { %603 = vmatpush1.bf16.msra.mxu0 %v261_v6  ;;  %v283_v6 = vunpack.c.l.s8.bf16 %v189_v4 }
  0xce   :  { %782 = vmatpush1.bf16.msra.mxu1 %v453_v7  ;;  %604 = vmatprep.subr.bf16.mxu0 %v264_v8  ;;  %v475_v7 = vunpack.c.l.s8.bf16 %v381_v5  ;;  %v286_v8 = vunpack.c.h.s8.bf16 %v190_v62 }
  0xcf   :  { %783 = vmatprep.subr.bf16.mxu1 %v456_v9  ;;  %v478_v9 = vunpack.c.h.s8.bf16 %v382_v63 }
  0xd1   :  { %605 = vmatpush1.bf16.msra.mxu0 %v263_v10  ;;  %v192_v10 = vld [vmem:[#allocation6 + $0x108] sm:$0xff] }
  0xd2   :  { %784 = vmatpush1.bf16.msra.mxu1 %v455_v11  ;;  %606 = vmatprep.subr.bf16.mxu0 %v266_v12  ;;  %v384_v11 = vld [vmem:[#allocation7 + $0x108] sm:$0xff]  ;;  %v285_v12 = vunpack.c.h.s8.bf16 %v189_v4  ;;  %v288_v16 = vunpack.c.l.s8.bf16 %v192_v10  ;;  %v290_v26 = vunpack.c.h.s8.bf16 %v192_v10 }
  0xd3   :  { %785 = vmatprep.subr.bf16.mxu1 %v458_v13  ;;  %v477_v13 = vunpack.c.h.s8.bf16 %v381_v5  ;;  %v480_v17 = vunpack.c.l.s8.bf16 %v384_v11  ;;  %v482_v27 = vunpack.c.h.s8.bf16 %v384_v11 }
  0xd5   :  { %607 = vmatpush1.bf16.msra.mxu0 %v265_v18  ;;  %v191_v18 = vld [vmem:[#allocation6 + $0x100] sm:$0xff] }
  0xd6   :  { %786 = vmatpush1.bf16.msra.mxu1 %v457_v19  ;;  %608 = vmatprep.subr.bf16.mxu0 %v268_v20  ;;  %v383_v19 = vld [vmem:[#allocation7 + $0x100] sm:$0xff]  ;;  %v137_v20 = vpack.c.bf16 %v129_v14, %v129_v14  ;;  %v202_v14 = vld [vmem:[#allocation6 + $0x158] sm:$0xff] }
  0xd7   :  { %787 = vmatprep.subr.bf16.mxu1 %v460_v21  ;;  %v153_v21 = vpack.c.bf16 %v145_v15, %v145_v15  ;;  %v394_v15 = vld [vmem:[#allocation7 + $0x158] sm:$0xff] }
  0xd9   :  { %609 = vmatpush1.bf16.msra.mxu0 %v267_v22  ;;  %v132_v22 = vld [vmem:[#allocation2 + $0x28] sm:$0xff] }
  0xda   :  { %788 = vmatpush1.bf16.msra.mxu1 %v459_v23  ;;  %610 = vmatprep.subr.bf16.mxu0 %v270_v24  ;;  %v148_v23 = vld [vmem:[#allocation4 + $0x28] sm:$0xff]  ;;  %v287_v24 = vunpack.c.l.s8.bf16 %v191_v18 }
  0xdb   :  { %789 = vmatprep.subr.bf16.mxu1 %v462_v25  ;;  %v479_v25 = vunpack.c.l.s8.bf16 %v383_v19 }
  0xdd   :  { %611 = vmatpush1.bf16.msra.mxu0 %v269_v30  ;;  %v140_v30 = vpack.c.bf16 %v132_v22, %v132_v22 }
  0xde   :  { %790 = vmatpush1.bf16.msra.mxu1 %v461_v31  ;;  %612 = vmatprep.subr.bf16.mxu0 %v272_v32  ;;  %v156_v31 = vpack.c.bf16 %v148_v23, %v148_v23  ;;  %v289_v32 = vunpack.c.h.s8.bf16 %v191_v18  ;;  %v308_v18 = vunpack.c.l.s8.bf16 %v202_v14 }
  0xdf   :  { %791 = vmatprep.subr.bf16.mxu1 %v464_v33  ;;  %v481_v33 = vunpack.c.h.s8.bf16 %v383_v19  ;;  %v500_v19 = vunpack.c.l.s8.bf16 %v394_v15 }
  0xe1   :  { %613 = vmatpush1.bf16.msra.mxu0 %v271_v34  ;;  %v292_v34 = vunpack.c.l.s8.bf16 %v194_v28 }
  0xe2   :  { %792 = vmatpush1.bf16.msra.mxu1 %v463_v35  ;;  %614 = vmatprep.subr.bf16.mxu0 %v274_v36  ;;  %v484_v35 = vunpack.c.l.s8.bf16 %v386_v29  ;;  %v193_v36 = vld [vmem:[#allocation6 + $0x110] sm:$0xff] }
  0xe3   :  { %793 = vmatprep.subr.bf16.mxu1 %v466_v37  ;;  %v385_v37 = vld [vmem:[#allocation7 + $0x110] sm:$0xff]  ;;  %v291_v38 = vunpack.c.l.s8.bf16 %v193_v36 }
  0xe4   :  { %v483_v39 = vunpack.c.l.s8.bf16 %v385_v37 }
  0xe5   :  { %615 = vmatpush1.bf16.msra.mxu0 %v273_v42  ;;  %v196_v42 = vld [vmem:[#allocation6 + $0x128] sm:$0xff] }
  0xe6   :  { %794 = vmatpush1.bf16.msra.mxu1 %v465_v43  ;;  %616 = vmatprep.subr.bf16.mxu0 %v276_v44  ;;  %v388_v43 = vld [vmem:[#allocation7 + $0x128] sm:$0xff]  ;;  %v293_v44 = vunpack.c.h.s8.bf16 %v193_v36 }
  0xe7   :  { %795 = vmatprep.subr.bf16.mxu1 %v468_v45  ;;  %v485_v45 = vunpack.c.h.s8.bf16 %v385_v37 }
  0xe9   :  { %617 = vmatpush1.bf16.msra.mxu0 %v275_v46  ;;  %v296_v46 = vunpack.c.l.s8.bf16 %v196_v42 }
  0xea   :  { %796 = vmatpush1.bf16.msra.mxu1 %v467_v47  ;;  %618 = vmatprep.subr.bf16.mxu0 %v278_v48  ;;  %v488_v47 = vunpack.c.l.s8.bf16 %v388_v43  ;;  %v195_v48 = vld [vmem:[#allocation6 + $0x120] sm:$0xff] }
  0xeb   :  { %797 = vmatprep.subr.bf16.mxu1 %v470_v49  ;;  %v387_v49 = vld [vmem:[#allocation7 + $0x120] sm:$0xff]  ;;  %v295_v50 = vunpack.c.l.s8.bf16 %v195_v48  ;;  %v297_v56 = vunpack.c.h.s8.bf16 %v195_v48 }
  0xec   :  { %v487_v51 = vunpack.c.l.s8.bf16 %v387_v49  ;;  %v489_v57 = vunpack.c.h.s8.bf16 %v387_v49 }
  0xed   :  { %619 = vmatpush1.bf16.msra.mxu0 %v277_v52  ;;  %v298_v52 = vunpack.c.h.s8.bf16 %v196_v42 }
  0xee   :  { %798 = vmatpush1.bf16.msra.mxu1 %v469_v53  ;;  %620 = vmatprep.subr.bf16.mxu0 %v280_v54  ;;  %v490_v53 = vunpack.c.h.s8.bf16 %v388_v43  ;;  %v198_v54 = vld [vmem:[#allocation6 + $0x138] sm:$0xff] }
  0xef   :  { %799 = vmatprep.subr.bf16.mxu1 %v472_v55  ;;  %v390_v55 = vld [vmem:[#allocation7 + $0x138] sm:$0xff] }
  0xf1   :  { %621 = vmatpush1.bf16.msra.mxu0 %v279_v58  ;;  %v300_v58 = vunpack.c.l.s8.bf16 %v198_v54 }
  0xf2   :  { %800 = vmatpush1.bf16.msra.mxu1 %v471_v59  ;;  %622 = vmatprep.subr.bf16.mxu0 %v282_v60  ;;  %v492_v59 = vunpack.c.l.s8.bf16 %v390_v55  ;;  %v197_v60 = vld [vmem:[#allocation6 + $0x130] sm:$0xff] }
  0xf3   :  { %801 = vmatprep.subr.bf16.mxu1 %v474_v61  ;;  %v389_v61 = vld [vmem:[#allocation7 + $0x130] sm:$0xff]  ;;  %v299_v62 = vunpack.c.l.s8.bf16 %v197_v60  ;;  %v301_v4 = vunpack.c.h.s8.bf16 %v197_v60 }
  0xf4   :  { %v491_v63 = vunpack.c.l.s8.bf16 %v389_v61  ;;  %v493_v5 = vunpack.c.h.s8.bf16 %v389_v61 }
  0xf5   :  { %623 = vmatpush1.bf16.msra.mxu0 %v281_v0  ;;  %v302_v0 = vunpack.c.h.s8.bf16 %v198_v54  ;;  %v131_v54 = vld [vmem:[#allocation2 + $0x20] sm:$0xff] }
  0xf6   :  { %802 = vmatpush1.bf16.msra.mxu1 %v473_v1  ;;  %624 = vmatprep.subr.bf16.mxu0 %v284_v2  ;;  %v494_v1 = vunpack.c.h.s8.bf16 %v390_v55  ;;  %v200_v2 = vld [vmem:[#allocation6 + $0x148] sm:$0xff]  ;;  %v147_v55 = vld [vmem:[#allocation4 + $0x20] sm:$0xff]  ;;  %v139_v60 = vpack.c.bf16 %v131_v54, %v131_v54  ;;  %v218_v54 = vld [vmem:[#allocation6 + $0x1d8] sm:$0xff] }
  0xf7   :  { %803 = vmatprep.subr.bf16.mxu1 %v476_v3  ;;  %v392_v3 = vld [vmem:[#allocation7 + $0x148] sm:$0xff]  ;;  %v155_v61 = vpack.c.bf16 %v147_v55, %v147_v55  ;;  %v410_v55 = vld [vmem:[#allocation7 + $0x1d8] sm:$0xff] }
  0xf9   :  { %625 = vmatpush1.bf16.msra.mxu0 %v283_v6  ;;  %v304_v6 = vunpack.c.l.s8.bf16 %v200_v2 }
  0xfa   :  { %804 = vmatpush1.bf16.msra.mxu1 %v475_v7  ;;  %626 = vmatprep.subr.bf16.mxu0 %v286_v8  ;;  %v496_v7 = vunpack.c.l.s8.bf16 %v392_v3  ;;  %v199_v8 = vld [vmem:[#allocation6 + $0x140] sm:$0xff] }
  0xfb   :  { %805 = vmatprep.subr.bf16.mxu1 %v478_v9  ;;  %v391_v9 = vld [vmem:[#allocation7 + $0x140] sm:$0xff]  ;;  %v303_v10 = vunpack.c.l.s8.bf16 %v199_v8 }
  0xfc   :  { %v495_v11 = vunpack.c.l.s8.bf16 %v391_v9 }
  0xfd   :  { %627 = vmatpush1.bf16.msra.mxu0 %v285_v12  ;;  %v306_v12 = vunpack.c.h.s8.bf16 %v200_v2 }
  0xfe   :  { %806 = vmatpush1.bf16.msra.mxu1 %v477_v13  ;;  %637 = vmatprep.subr.bf16.mxu0 %v288_v16  ;;  %v498_v13 = vunpack.c.h.s8.bf16 %v392_v3  ;;  %v305_v16 = vunpack.c.h.s8.bf16 %v199_v8 }
  0xff   :  { %816 = vmatprep.subr.bf16.mxu1 %v480_v17  ;;  %v497_v17 = vunpack.c.h.s8.bf16 %v391_v9 }
 0x100   :  { %629 = vmatmul.mubr.bf16.vlgmr.msra.gmra.mrb[0].mxu0 %v137_v20  ;;  %v201_v20 = vld [vmem:[#allocation6 + $0x150] sm:$0xff] }
 0x101   :  { %808 = vmatmul.mubr.bf16.vlgmr.msra.gmra.mrb[0].mxu1 %v153_v21  ;;  %638 = vmatpush1.bf16.msra.mxu0 %v287_v24  ;;  %v393_v21 = vld [vmem:[#allocation7 + $0x150] sm:$0xff]  ;;  %v307_v22 = vunpack.c.l.s8.bf16 %v201_v20  ;;  %v310_v24 = vunpack.c.h.s8.bf16 %v202_v14  ;;  %v309_v28 = vunpack.c.h.s8.bf16 %v201_v20 }
 0x102   :  { %817 = vmatpush1.bf16.msra.mxu1 %v479_v25  ;;  %639 = vmatprep.subr.bf16.mxu0 %v290_v26  ;;  %v499_v23 = vunpack.c.l.s8.bf16 %v393_v21  ;;  %v502_v25 = vunpack.c.h.s8.bf16 %v394_v15  ;;  %v204_v26 = vld [vmem:[#allocation6 + $0x168] sm:$0xff]  ;;  %v501_v29 = vunpack.c.h.s8.bf16 %v393_v21 }
 0x103   :  { %818 = vmatprep.subr.bf16.mxu1 %v482_v27  ;;  %669 = vmatprep.mubr.bf16.mxu0 %v140_v30  ;;  %v396_v27 = vld [vmem:[#allocation7 + $0x168] sm:$0xff]  ;;  %v312_v30 = vunpack.c.l.s8.bf16 %v204_v26  ;;  %v314_v36 = vunpack.c.h.s8.bf16 %v204_v26 }
 0x104   :  { %848 = vmatprep.mubr.bf16.mxu1 %v156_v31  ;;  %v504_v31 = vunpack.c.l.s8.bf16 %v396_v27  ;;  %v506_v37 = vunpack.c.h.s8.bf16 %v396_v27 }
 0x105   :  { %640 = vmatpush1.bf16.msra.mxu0 %v289_v32  ;;  %v203_v32 = vld [vmem:[#allocation6 + $0x160] sm:$0xff] }
 0x106   :  { %819 = vmatpush1.bf16.msra.mxu1 %v481_v33  ;;  %641 = vmatprep.subr.bf16.mxu0 %v292_v34  ;;  %v395_v33 = vld [vmem:[#allocation7 + $0x160] sm:$0xff]  ;;  %v311_v34 = vunpack.c.l.s8.bf16 %v203_v32 }
 0x107   :  { %820 = vmatprep.subr.bf16.mxu1 %v484_v35  ;;  %v503_v35 = vunpack.c.l.s8.bf16 %v395_v33 }
 0x109   :  { %642 = vmatpush1.bf16.msra.mxu0 %v291_v38  ;;  %v206_v38 = vld [vmem:[#allocation6 + $0x178] sm:$0xff] }
 0x10a   :  { %821 = vmatpush1.bf16.msra.mxu1 %v483_v39  ;;  %643 = vmatprep.subr.bf16.mxu0 %v294_v40  ;;  %v398_v39 = vld [vmem:[#allocation7 + $0x178] sm:$0xff]  ;;  %v313_v40 = vunpack.c.h.s8.bf16 %v203_v32  ;;  %v316_v42 = vunpack.c.l.s8.bf16 %v206_v38  ;;  %v318_v48 = vunpack.c.h.s8.bf16 %v206_v38 }
 0x10b   :  { %822 = vmatprep.subr.bf16.mxu1 %v486_v41  ;;  %v505_v41 = vunpack.c.h.s8.bf16 %v395_v33  ;;  %v508_v43 = vunpack.c.l.s8.bf16 %v398_v39  ;;  %v510_v49 = vunpack.c.h.s8.bf16 %v398_v39 }
 0x10d   :  { %644 = vmatpush1.bf16.msra.mxu0 %v293_v44  ;;  %v205_v44 = vld [vmem:[#allocation6 + $0x170] sm:$0xff] }
 0x10e   :  { %823 = vmatpush1.bf16.msra.mxu1 %v485_v45  ;;  %645 = vmatprep.subr.bf16.mxu0 %v296_v46  ;;  %v397_v45 = vld [vmem:[#allocation7 + $0x170] sm:$0xff]  ;;  %v315_v46 = vunpack.c.l.s8.bf16 %v205_v44 }
 0x10f   :  { %824 = vmatprep.subr.bf16.mxu1 %v488_v47  ;;  %v507_v47 = vunpack.c.l.s8.bf16 %v397_v45 }
 0x111   :  { %646 = vmatpush1.bf16.msra.mxu0 %v295_v50  ;;  %v208_v50 = vld [vmem:[#allocation6 + $0x188] sm:$0xff] }
 0x112   :  { %825 = vmatpush1.bf16.msra.mxu1 %v487_v51  ;;  %647 = vmatprep.subr.bf16.mxu0 %v298_v52  ;;  %v400_v51 = vld [vmem:[#allocation7 + $0x188] sm:$0xff]  ;;  %v317_v52 = vunpack.c.h.s8.bf16 %v205_v44  ;;  %v322_v2 = vunpack.c.h.s8.bf16 %v208_v50 }
 0x113   :  { %826 = vmatprep.subr.bf16.mxu1 %v490_v53  ;;  %v509_v53 = vunpack.c.h.s8.bf16 %v397_v45  ;;  %v514_v3 = vunpack.c.h.s8.bf16 %v400_v51 }
 0x115   :  { %648 = vmatpush1.bf16.msra.mxu0 %v297_v56  ;;  %v320_v56 = vunpack.c.l.s8.bf16 %v208_v50 }
 0x116   :  { %827 = vmatpush1.bf16.msra.mxu1 %v489_v57  ;;  %649 = vmatprep.subr.bf16.mxu0 %v300_v58  ;;  %v512_v57 = vunpack.c.l.s8.bf16 %v400_v51  ;;  %v207_v58 = vld [vmem:[#allocation6 + $0x180] sm:$0xff] }
 0x117   :  { %828 = vmatprep.subr.bf16.mxu1 %v492_v59  ;;  %v399_v59 = vld [vmem:[#allocation7 + $0x180] sm:$0xff]  ;;  %v321_v8 = vunpack.c.h.s8.bf16 %v207_v58 }
 0x118   :  { %v513_v9 = vunpack.c.h.s8.bf16 %v399_v59 }
 0x119   :  { %650 = vmatpush1.bf16.msra.mxu0 %v299_v62  ;;  %v134_v62 = vld [vmem:[#allocation2 + $0x38] sm:$0xff] }
 0x11a   :  { %829 = vmatpush1.bf16.msra.mxu1 %v491_v63  ;;  %651 = vmatprep.subr.bf16.mxu0 %v302_v0  ;;  %v150_v63 = vld [vmem:[#allocation4 + $0x38] sm:$0xff]  ;;  %v319_v0 = vunpack.c.l.s8.bf16 %v207_v58  ;;  %v340_v58 = vunpack.c.l.s8.bf16 %v218_v54 }
 0x11b   :  { %830 = vmatprep.subr.bf16.mxu1 %v494_v1  ;;  %v511_v1 = vunpack.c.l.s8.bf16 %v399_v59  ;;  %v532_v59 = vunpack.c.l.s8.bf16 %v410_v55 }
 0x11d   :  { %652 = vmatpush1.bf16.msra.mxu0 %v301_v4  ;;  %v210_v4 = vld [vmem:[#allocation6 + $0x198] sm:$0xff] }
 0x11e   :  { %831 = vmatpush1.bf16.msra.mxu1 %v493_v5  ;;  %653 = vmatprep.subr.bf16.mxu0 %v304_v6  ;;  %v402_v5 = vld [vmem:[#allocation7 + $0x198] sm:$0xff]  ;;  %v142_v6 = vpack.c.bf16 %v134_v62, %v134_v62 }
 0x11f   :  { %832 = vmatprep.subr.bf16.mxu1 %v496_v7  ;;  %v158_v7 = vpack.c.bf16 %v150_v63, %v150_v63 }
 0x121   :  { %654 = vmatpush1.bf16.msra.mxu0 %v303_v10  ;;  %v324_v10 = vunpack.c.l.s8.bf16 %v210_v4 }
 0x122   :  { %833 = vmatpush1.bf16.msra.mxu1 %v495_v11  ;;  %655 = vmatprep.subr.bf16.mxu0 %v306_v12  ;;  %v516_v11 = vunpack.c.l.s8.bf16 %v402_v5  ;;  %v209_v12 = vld [vmem:[#allocation6 + $0x190] sm:$0xff] }
 0x123   :  { %834 = vmatprep.subr.bf16.mxu1 %v498_v13  ;;  %v401_v13 = vld [vmem:[#allocation7 + $0x190] sm:$0xff]  ;;  %v323_v14 = vunpack.c.l.s8.bf16 %v209_v12  ;;  %v325_v20 = vunpack.c.h.s8.bf16 %v209_v12 }
 0x124   :  { %v515_v15 = vunpack.c.l.s8.bf16 %v401_v13  ;;  %v517_v21 = vunpack.c.h.s8.bf16 %v401_v13 }
 0x125   :  { %656 = vmatpush1.bf16.msra.mxu0 %v305_v16  ;;  %v326_v16 = vunpack.c.h.s8.bf16 %v210_v4 }
 0x126   :  { %835 = vmatpush1.bf16.msra.mxu1 %v497_v17  ;;  %657 = vmatprep.subr.bf16.mxu0 %v308_v18  ;;  %v518_v17 = vunpack.c.h.s8.bf16 %v402_v5  ;;  %v212_v18 = vld [vmem:[#allocation6 + $0x1a8] sm:$0xff] }
 0x127   :  { %836 = vmatprep.subr.bf16.mxu1 %v500_v19  ;;  %v404_v19 = vld [vmem:[#allocation7 + $0x1a8] sm:$0xff] }
 0x129   :  { %658 = vmatpush1.bf16.msra.mxu0 %v307_v22  ;;  %v328_v22 = vunpack.c.l.s8.bf16 %v212_v18 }
 0x12a   :  { %837 = vmatpush1.bf16.msra.mxu1 %v499_v23  ;;  %659 = vmatprep.subr.bf16.mxu0 %v310_v24  ;;  %v520_v23 = vunpack.c.l.s8.bf16 %v404_v19  ;;  %v211_v24 = vld [vmem:[#allocation6 + $0x1a0] sm:$0xff] }
 0x12b   :  { %838 = vmatprep.subr.bf16.mxu1 %v502_v25  ;;  %v403_v25 = vld [vmem:[#allocation7 + $0x1a0] sm:$0xff]  ;;  %v327_v26 = vunpack.c.l.s8.bf16 %v211_v24  ;;  %v329_v32 = vunpack.c.h.s8.bf16 %v211_v24 }
 0x12c   :  { %v519_v27 = vunpack.c.l.s8.bf16 %v403_v25  ;;  %v521_v33 = vunpack.c.h.s8.bf16 %v403_v25 }
 0x12d   :  { %660 = vmatpush1.bf16.msra.mxu0 %v309_v28  ;;  %v330_v28 = vunpack.c.h.s8.bf16 %v212_v18 }
 0x12e   :  { %839 = vmatpush1.bf16.msra.mxu1 %v501_v29  ;;  %661 = vmatprep.subr.bf16.mxu0 %v312_v30  ;;  %v522_v29 = vunpack.c.h.s8.bf16 %v404_v19  ;;  %v214_v30 = vld [vmem:[#allocation6 + $0x1b8] sm:$0xff] }
 0x12f   :  { %840 = vmatprep.subr.bf16.mxu1 %v504_v31  ;;  %v406_v31 = vld [vmem:[#allocation7 + $0x1b8] sm:$0xff] }
 0x131   :  { %662 = vmatpush1.bf16.msra.mxu0 %v311_v34  ;;  %v332_v34 = vunpack.c.l.s8.bf16 %v214_v30 }
 0x132   :  { %841 = vmatpush1.bf16.msra.mxu1 %v503_v35  ;;  %663 = vmatprep.subr.bf16.mxu0 %v314_v36  ;;  %v524_v35 = vunpack.c.l.s8.bf16 %v406_v31  ;;  %v213_v36 = vld [vmem:[#allocation6 + $0x1b0] sm:$0xff] }
 0x133   :  { %842 = vmatprep.subr.bf16.mxu1 %v506_v37  ;;  %v405_v37 = vld [vmem:[#allocation7 + $0x1b0] sm:$0xff]  ;;  %v331_v38 = vunpack.c.l.s8.bf16 %v213_v36  ;;  %v333_v44 = vunpack.c.h.s8.bf16 %v213_v36  ;;  %v2451_v36 = vld [vmem:[#allocation9 + $0x19c] ss:$12 sps:$4 sm:$0xff]  }
 0x134   :  { %v523_v39 = vunpack.c.l.s8.bf16 %v405_v37  ;;  %v525_v45 = vunpack.c.h.s8.bf16 %v405_v37  ;;  %v2478_v37 = vld [vmem:[#allocation9 + $0x260] ss:$12 sps:$4 sm:$0xff]  }
 0x135   :  { %664 = vmatpush1.bf16.msra.mxu0 %v313_v40  ;;  %v334_v40 = vunpack.c.h.s8.bf16 %v214_v30  ;;  %v2448_v30 = vld [vmem:[#allocation9 + $0x184] ss:$12 sps:$4 sm:$0xff]  }
 0x136   :  { %843 = vmatpush1.bf16.msra.mxu1 %v505_v41  ;;  %665 = vmatprep.subr.bf16.mxu0 %v316_v42  ;;  %v526_v41 = vunpack.c.h.s8.bf16 %v406_v31  ;;  %v216_v42 = vld [vmem:[#allocation6 + $0x1c8] sm:$0xff] }
 0x137   :  { %844 = vmatprep.subr.bf16.mxu1 %v508_v43  ;;  %v408_v43 = vld [vmem:[#allocation7 + $0x1c8] sm:$0xff] }
 0x138   :  { %v2473_v31 = vld [vmem:[#allocation9 + $0x248] ss:$12 sps:$4 sm:$0xff]  }
 0x139   :  { %666 = vmatpush1.bf16.msra.mxu0 %v315_v46  ;;  %v336_v46 = vunpack.c.l.s8.bf16 %v216_v42 }
 0x13a   :  { %845 = vmatpush1.bf16.msra.mxu1 %v507_v47  ;;  %667 = vmatprep.subr.bf16.mxu0 %v318_v48  ;;  %v528_v47 = vunpack.c.l.s8.bf16 %v408_v43  ;;  %v215_v48 = vld [vmem:[#allocation6 + $0x1c0] sm:$0xff] }
 0x13b   :  { %846 = vmatprep.subr.bf16.mxu1 %v510_v49  ;;  %v407_v49 = vld [vmem:[#allocation7 + $0x1c0] sm:$0xff]  ;;  %v335_v50 = vunpack.c.l.s8.bf16 %v215_v48 }
 0x13c   :  { %v527_v51 = vunpack.c.l.s8.bf16 %v407_v49 }
 0x13d   :  { %668 = vmatpush1.bf16.msra.mxu0 %v317_v52  ;;  %v338_v52 = vunpack.c.h.s8.bf16 %v216_v42  ;;  %v2452_v42 = vld [vmem:[#allocation9 + $0x1b0] ss:$12 sps:$4 sm:$0xff]  }
 0x13e   :  { %847 = vmatpush1.bf16.msra.mxu1 %v509_v53  ;;  %678 = vmatprep.subr.bf16.mxu0 %v320_v56  ;;  %v530_v53 = vunpack.c.h.s8.bf16 %v408_v43  ;;  %v337_v56 = vunpack.c.h.s8.bf16 %v215_v48  ;;  %v2484_v43 = vld [vmem:[#allocation9 + $0x1b8] ss:$12 sps:$4 sm:$0xff]  }
 0x13f   :  { %857 = vmatprep.subr.bf16.mxu1 %v512_v57  ;;  %v529_v57 = vunpack.c.h.s8.bf16 %v407_v49  ;;  %v2460_v48 = vld [vmem:[#allocation9 + $0x1e4] ss:$12 sps:$4 sm:$0xff]   ;;  %v2493_v49 = vld [vmem:[#allocation9 + $0x2a8] ss:$12 sps:$4 sm:$0xff]  }
 0x140   :  { %670 = vmatmul.mubr.bf16.vlgmr.msra.gmra.mrb[0].mxu0 %v139_v60  ;;  %v217_v60 = vld [vmem:[#allocation6 + $0x1d0] sm:$0xff] }
 0x141   :  { %849 = vmatmul.mubr.bf16.vlgmr.msra.gmra.mrb[0].mxu1 %v155_v61  ;;  %679 = vmatpush1.bf16.msra.mxu0 %v319_v0  ;;  %v409_v61 = vld [vmem:[#allocation7 + $0x1d0] sm:$0xff]  ;;  %v339_v62 = vunpack.c.l.s8.bf16 %v217_v60  ;;  %v342_v0 = vunpack.c.h.s8.bf16 %v218_v54  ;;  %v341_v4 = vunpack.c.h.s8.bf16 %v217_v60  ;;  %v2461_v54 = vld [vmem:[#allocation9 + $0x1f8] ss:$12 sps:$4 sm:$0xff]  }
 0x142   :  { %858 = vmatpush1.bf16.msra.mxu1 %v511_v1  ;;  %680 = vmatprep.subr.bf16.mxu0 %v322_v2  ;;  %v531_v63 = vunpack.c.l.s8.bf16 %v409_v61  ;;  %v534_v1 = vunpack.c.h.s8.bf16 %v410_v55  ;;  %v220_v2 = vld [vmem:[#allocation6 + $0x1e8] sm:$0xff]  ;;  %v533_v5 = vunpack.c.h.s8.bf16 %v409_v61  ;;  %v2472_v60 = vld [vmem:[#allocation9 + $0x244] ss:$12 sps:$4 sm:$0xff]  }
 0x143   :  { %859 = vmatprep.subr.bf16.mxu1 %v514_v3  ;;  %710 = vmatprep.mubr.bf16.mxu0 %v142_v6  ;;  %v412_v3 = vld [vmem:[#allocation7 + $0x1e8] sm:$0xff]  ;;  %v344_v6 = vunpack.c.l.s8.bf16 %v220_v2  ;;  %v346_v12 = vunpack.c.h.s8.bf16 %v220_v2 }
 0x144   :  { %889 = vmatprep.mubr.bf16.mxu1 %v158_v7  ;;  %v536_v7 = vunpack.c.l.s8.bf16 %v412_v3  ;;  %v538_v13 = vunpack.c.h.s8.bf16 %v412_v3  ;;  %v2499_v55 = vld [vmem:[#allocation9 + $0x200] ss:$12 sps:$4 sm:$0xff]   ;;  %v2485_v3 = vld [vmem:[#allocation9 + $0x288] ss:$12 sps:$4 sm:$0xff]  }
 0x145   :  { %681 = vmatpush1.bf16.msra.mxu0 %v321_v8  ;;  %v219_v8 = vld [vmem:[#allocation6 + $0x1e0] sm:$0xff]  ;;  %v2487_v2 = vld [vmem:[#allocation9 + $0x28c] ss:$12 sps:$4 sm:$0xff]  }
 0x146   :  { %860 = vmatpush1.bf16.msra.mxu1 %v513_v9  ;;  %682 = vmatprep.subr.bf16.mxu0 %v324_v10  ;;  %v411_v9 = vld [vmem:[#allocation7 + $0x1e0] sm:$0xff]  ;;  %v343_v10 = vunpack.c.l.s8.bf16 %v219_v8 }
 0x147   :  { %861 = vmatprep.subr.bf16.mxu1 %v516_v11  ;;  %v535_v11 = vunpack.c.l.s8.bf16 %v411_v9  ;;  %v2470_v61 = vld [vmem:[#allocation9 + $0x240] ss:$12 sps:$4 sm:$0xff]  }
 0x149   :  { %683 = vmatpush1.bf16.msra.mxu0 %v323_v14  ;;  %v222_v14 = vld [vmem:[#allocation6 + $0x1f8] sm:$0xff] }
 0x14a   :  { %862 = vmatpush1.bf16.msra.mxu1 %v515_v15  ;;  %684 = vmatprep.subr.bf16.mxu0 %v326_v16  ;;  %v414_v15 = vld [vmem:[#allocation7 + $0x1f8] sm:$0xff]  ;;  %v345_v16 = vunpack.c.h.s8.bf16 %v219_v8  ;;  %v348_v18 = vunpack.c.l.s8.bf16 %v222_v14  ;;  %v350_v24 = vunpack.c.h.s8.bf16 %v222_v14  ;;  %v2502_v8 = vld [vmem:[#allocation9 + $0x2d4] ss:$12 sps:$4 sm:$0xff]  }
 0x14b   :  { %863 = vmatprep.subr.bf16.mxu1 %v518_v17  ;;  %v537_v17 = vunpack.c.h.s8.bf16 %v411_v9  ;;  %v540_v19 = vunpack.c.l.s8.bf16 %v414_v15  ;;  %v542_v25 = vunpack.c.h.s8.bf16 %v414_v15  ;;  %v2500_v9 = vld [vmem:[#allocation9 + $0x2d0] ss:$12 sps:$4 sm:$0xff]   ;;  %v2505_v14 = vld [vmem:[#allocation9 + $0x2e8] ss:$12 sps:$4 sm:$0xff]  }
 0x14c   :  { %v2509_v15 = vld [vmem:[#allocation9 + $0x230] ss:$12 sps:$4 sm:$0xff]  }
 0x14d   :  { %685 = vmatpush1.bf16.msra.mxu0 %v325_v20  ;;  %v221_v20 = vld [vmem:[#allocation6 + $0x1f0] sm:$0xff] }
 0x14e   :  { %864 = vmatpush1.bf16.msra.mxu1 %v517_v21  ;;  %686 = vmatprep.subr.bf16.mxu0 %v328_v22  ;;  %v413_v21 = vld [vmem:[#allocation7 + $0x1f0] sm:$0xff]  ;;  %v347_v22 = vunpack.c.l.s8.bf16 %v221_v20 }
 0x14f   :  { %865 = vmatprep.subr.bf16.mxu1 %v520_v23  ;;  %v539_v23 = vunpack.c.l.s8.bf16 %v413_v21 }
 0x151   :  { %687 = vmatpush1.bf16.msra.mxu0 %v327_v26  ;;  %v349_v26 = vunpack.c.h.s8.bf16 %v221_v20 }
 0x152   :  { %866 = vmatpush1.bf16.msra.mxu1 %v519_v27  ;;  %688 = vmatprep.subr.bf16.mxu0 %v330_v28  ;;  %v541_v27 = vunpack.c.h.s8.bf16 %v413_v21  ;;  %v133_v28 = vld [vmem:[#allocation2 + $0x30] sm:$0xff]  ;;  %v2145_v21 = vld [vmem:[%s3008_s7 + $0x1] ss:$2 sm:$0x3] }
 0x153   :  { %867 = vmatprep.subr.bf16.mxu1 %v522_v29  ;;  %v149_v29 = vld [vmem:[#allocation4 + $0x30] sm:$0xff] }
 0x155   :  { %689 = vmatpush1.bf16.msra.mxu0 %v329_v32  ;;  %v141_v32 = vpack.c.bf16 %v133_v28, %v133_v28 }
 0x156   :  { %868 = vmatpush1.bf16.msra.mxu1 %v521_v33  ;;  %690 = vmatprep.subr.bf16.mxu0 %v332_v34  ;;  %v157_v33 = vpack.c.bf16 %v149_v29, %v149_v29  ;;  %v2446_v34 = vld [vmem:[#allocation9 + $0x180] ss:$12 sps:$4 sm:$0xff]  }
 0x157   :  { %869 = vmatprep.subr.bf16.mxu1 %v524_v35  ;;  %v2474_v35 = vld [vmem:[#allocation9 + $0x188] ss:$12 sps:$4 sm:$0xff]  }
 0x159   :  { %691 = vmatpush1.bf16.msra.mxu0 %v331_v38  ;;  %v2449_v38 = vld [vmem:[#allocation9 + $0x198] ss:$12 sps:$4 sm:$0xff]  }
 0x15a   :  { %870 = vmatpush1.bf16.msra.mxu1 %v523_v39  ;;  %692 = vmatprep.subr.bf16.mxu0 %v334_v40  ;;  %v2479_v39 = vld [vmem:[#allocation9 + $0x1a0] ss:$12 sps:$4 sm:$0xff]  }
 0x15b   :  { %871 = vmatprep.subr.bf16.mxu1 %v526_v41  ;;  %v2454_v40 = vld [vmem:[#allocation9 + $0x1b4] ss:$12 sps:$4 sm:$0xff]   ;;  %v2483_v41 = vld [vmem:[#allocation9 + $0x278] ss:$12 sps:$4 sm:$0xff]  }
 0x15d   :  { %693 = vmatpush1.bf16.msra.mxu0 %v333_v44  ;;  %v2457_v44 = vld [vmem:[#allocation9 + $0x1cc] ss:$12 sps:$4 sm:$0xff]  }
 0x15e   :  { %872 = vmatpush1.bf16.msra.mxu1 %v525_v45  ;;  %694 = vmatprep.subr.bf16.mxu0 %v336_v46  ;;  %v2488_v45 = vld [vmem:[#allocation9 + $0x290] ss:$12 sps:$4 sm:$0xff]   ;;  %v2455_v46 = vld [vmem:[#allocation9 + $0x1c8] ss:$12 sps:$4 sm:$0xff]  }
 0x15f   :  { %873 = vmatprep.subr.bf16.mxu1 %v528_v47  ;;  %v2489_v47 = vld [vmem:[#allocation9 + $0x1d0] ss:$12 sps:$4 sm:$0xff]  }
 0x161   :  { %695 = vmatpush1.bf16.msra.mxu0 %v335_v50  ;;  %v2458_v50 = vld [vmem:[#allocation9 + $0x1e0] ss:$12 sps:$4 sm:$0xff]  }
 0x162   :  { %874 = vmatpush1.bf16.msra.mxu1 %v527_v51  ;;  %696 = vmatprep.subr.bf16.mxu0 %v338_v52  ;;  %v2494_v51 = vld [vmem:[#allocation9 + $0x1e8] ss:$12 sps:$4 sm:$0xff]  }
 0x163   :  { %875 = vmatprep.subr.bf16.mxu1 %v530_v53  ;;  %v2463_v52 = vld [vmem:[#allocation9 + $0x1fc] ss:$12 sps:$4 sm:$0xff]   ;;  %v2498_v53 = vld [vmem:[#allocation9 + $0x2c0] ss:$12 sps:$4 sm:$0xff]  }
 0x165   :  { %697 = vmatpush1.bf16.msra.mxu0 %v337_v56  ;;  %v2466_v56 = vld [vmem:[#allocation9 + $0x214] ss:$12 sps:$4 sm:$0xff]  }
 0x166   :  { %876 = vmatpush1.bf16.msra.mxu1 %v529_v57  ;;  %698 = vmatprep.subr.bf16.mxu0 %v340_v58  ;;  %v2464_v57 = vld [vmem:[#allocation9 + $0x210] ss:$12 sps:$4 sm:$0xff]   ;;  %v2469_v58 = vld [vmem:[#allocation9 + $0x22c] ss:$12 sps:$4 sm:$0xff]  }
 0x167   :  { %877 = vmatprep.subr.bf16.mxu1 %v532_v59  ;;  %v2467_v59 = vld [vmem:[#allocation9 + $0x228] ss:$12 sps:$4 sm:$0xff]  }
 0x169   :  { %699 = vmatpush1.bf16.msra.mxu0 %v339_v62  ;;  %v2477_v62 = vld [vmem:[#allocation9 + $0x25c] ss:$12 sps:$4 sm:$0xff]  }
 0x16a   :  { %878 = vmatpush1.bf16.msra.mxu1 %v531_v63  ;;  %700 = vmatprep.subr.bf16.mxu0 %v342_v0  ;;  %v2475_v63 = vld [vmem:[#allocation9 + $0x258] ss:$12 sps:$4 sm:$0xff]   ;;  %v2482_v0 = vld [vmem:[#allocation9 + $0x274] ss:$12 sps:$4 sm:$0xff]  }
 0x16b   :  { %879 = vmatprep.subr.bf16.mxu1 %v534_v1  ;;  %v2480_v1 = vld [vmem:[#allocation9 + $0x270] ss:$12 sps:$4 sm:$0xff]  }
 0x16d   :  { %701 = vmatpush1.bf16.msra.mxu0 %v341_v4  ;;  %v2492_v4 = vld [vmem:[#allocation9 + $0x2a4] ss:$12 sps:$4 sm:$0xff]  }
 0x16e   :  { %880 = vmatpush1.bf16.msra.mxu1 %v533_v5  ;;  %702 = vmatprep.subr.bf16.mxu0 %v344_v6  ;;  %v2490_v5 = vld [vmem:[#allocation9 + $0x2a0] ss:$12 sps:$4 sm:$0xff]   ;;  %v2497_v6 = vld [vmem:[#allocation9 + $0x2bc] ss:$12 sps:$4 sm:$0xff]  }
 0x16f   :  { %881 = vmatprep.subr.bf16.mxu1 %v536_v7  ;;  %v2495_v7 = vld [vmem:[#allocation9 + $0x2b8] ss:$12 sps:$4 sm:$0xff]  }
 0x171   :  { %703 = vmatpush1.bf16.msra.mxu0 %v343_v10  ;;  %v2503_v10 = vld [vmem:[#allocation9 + $0x2d8] ss:$12 sps:$4 sm:$0xff]  }
 0x172   :  { %882 = vmatpush1.bf16.msra.mxu1 %v535_v11  ;;  %704 = vmatprep.subr.bf16.mxu0 %v346_v12  ;;  %v2504_v11 = vld [vmem:[#allocation9 + $0x218] ss:$12 sps:$4 sm:$0xff]  }
 0x173   :  { %883 = vmatprep.subr.bf16.mxu1 %v538_v13  ;;  %v2507_v12 = vld [vmem:[#allocation9 + $0x2ec] ss:$12 sps:$4 sm:$0xff]   ;;  %v2508_v13 = vld [vmem:[#allocation9 + $0x2f0] ss:$12 sps:$4 sm:$0xff]  }
 0x175   :  { %705 = vmatpush1.bf16.msra.mxu0 %v345_v16  ;;  %v2512_v16 = vld [vmem:[#allocation9 + $0x4] ss:$12 sps:$4 sm:$0xff]  }
 0x176   :  { %884 = vmatpush1.bf16.msra.mxu1 %v537_v17  ;;  %706 = vmatprep.subr.bf16.mxu0 %v348_v18  ;;  %v2513_v17 = vld [vmem:[#allocation9 + $0xc8] ss:$12 sps:$4 sm:$0xff]   ;;  %v545_v18 = vlaneseq }
 0x177   :  { %885 = vmatprep.subr.bf16.mxu1 %v540_v19 }
 0x178   :  { %v2940_v19 = vshrl.u32 %v545_v18, 7 }
 0x179   :  { %707 = vmatpush1.bf16.msra.mxu0 %v347_v22 }
 0x17a   :  { %886 = vmatpush1.bf16.msra.mxu1 %v539_v23  ;;  %708 = vmatprep.subr.bf16.mxu0 %v350_v24  ;;  %v2943_v20 = vsub.s32 0, %v2940_v19  ;;  %v2949_v22 = vsub.s32 1, %v2940_v19  ;;  %v2954_v23 = vld [vmem:[%s3008_s7] ss:$2 sm:$0x3] }
 0x17b   :  { %887 = vmatprep.subr.bf16.mxu1 %v542_v25 }
 0x17c   :  { %v727_v24 = vrot.slane %v2145_v21, %v2943_v20  ;;  %v552_v25 = vrot.slane %v2954_v23, %v2949_v22 }
 0x17d   :  { %709 = vmatpush1.bf16.msra.mxu0 %v349_v26  ;;  %v731_v26 = vrot.slane %v2145_v21, %v2949_v22  ;;  %v2558_v21 = vld [vmem:[#allocation9 + $0xf4] ss:$12 sps:$4 sm:$0xff]  }
 0x17e   :  { %888 = vmatpush1.bf16.msra.mxu1 %v541_v27  ;;  %1288 = vmatprep.subr.bf16.mxu0 %v2448_v30 }
 0x17f   :  { %2277 = vmatprep.subr.bf16.mxu1 %v2473_v31 }
 0x180   :  { %711 = vmatmul.mubr.bf16.vlgmr.msra.gmra.mrb[0].mxu0 %v141_v32 }
 0x181   :  { %890 = vmatmul.mubr.bf16.vlgmr.msra.gmra.mrb[0].mxu1 %v157_v33  ;;  %1289 = vmatpush1.bf16.msra.mxu0 %v2446_v34 }
 0x182   :  { %2278 = vmatpush3.bf16.msra.mxu1 %v2474_v35  ;;  %1290 = vmatprep.subr.bf16.mxu0 %v2451_v36 }
 0x183   :  { %2279 = vmatprep.subr.bf16.mxu1 %v2478_v37 }
 0x185   :  { %1291 = vmatpush1.bf16.msra.mxu0 %v2449_v38 }
 0x186   :  { %2280 = vmatpush3.bf16.msra.mxu1 %v2479_v39  ;;  %1292 = vmatprep.subr.bf16.mxu0 %v2454_v40 }
 0x187   :  { %2281 = vmatprep.subr.bf16.mxu1 %v2483_v41 }
 0x189   :  { %1293 = vmatpush1.bf16.msra.mxu0 %v2452_v42  ;;  %v2510_v42 = vld [vmem:[#allocation9] ss:$12 sps:$4 sm:$0xff]  }
 0x18a   :  { %2282 = vmatpush3.bf16.msra.mxu1 %v2484_v43  ;;  %1294 = vmatprep.subr.bf16.mxu0 %v2457_v44  ;;  %v2514_v43 = vld [vmem:[#allocation9 + $0x8] ss:$12 sps:$4 sm:$0xff]  }
 0x18b   :  { %2283 = vmatprep.subr.bf16.mxu1 %v2488_v45  ;;  %v2517_v45 = vld [vmem:[#allocation9 + $0x1c] ss:$12 sps:$4 sm:$0xff]  }
 0x18d   :  { %1295 = vmatpush1.bf16.msra.mxu0 %v2455_v46  ;;  %v2518_v46 = vld [vmem:[#allocation9 + $0xe0] ss:$12 sps:$4 sm:$0xff]  }
 0x18e   :  { %2284 = vmatpush3.bf16.msra.mxu1 %v2489_v47  ;;  %1296 = vmatprep.subr.bf16.mxu0 %v2460_v48  ;;  %v2515_v48 = vld [vmem:[#allocation9 + $0x18] ss:$12 sps:$4 sm:$0xff]  }
 0x18f   :  { %2285 = vmatprep.subr.bf16.mxu1 %v2493_v49  ;;  %v2519_v49 = vld [vmem:[#allocation9 + $0x20] ss:$12 sps:$4 sm:$0xff]  }
 0x191   :  { %1297 = vmatpush1.bf16.msra.mxu0 %v2458_v50  ;;  %v2522_v50 = vld [vmem:[#allocation9 + $0x34] ss:$12 sps:$4 sm:$0xff]  }
 0x192   :  { %2286 = vmatpush3.bf16.msra.mxu1 %v2494_v51  ;;  %1298 = vmatprep.subr.bf16.mxu0 %v2463_v52  ;;  %v2523_v51 = vld [vmem:[#allocation9 + $0xf8] ss:$12 sps:$4 sm:$0xff]   ;;  %v2520_v52 = vld [vmem:[#allocation9 + $0x30] ss:$12 sps:$4 sm:$0xff]  }
 0x193   :  { %2287 = vmatprep.subr.bf16.mxu1 %v2498_v53  ;;  %v2524_v53 = vld [vmem:[#allocation9 + $0x38] ss:$12 sps:$4 sm:$0xff]  }
 0x195   :  { %1299 = vmatpush1.bf16.msra.mxu0 %v2461_v54  ;;  %v2527_v54 = vld [vmem:[#allocation9 + $0x4c] ss:$12 sps:$4 sm:$0xff]  }
 0x196   :  { %2288 = vmatpush3.bf16.msra.mxu1 %v2499_v55  ;;  %1300 = vmatprep.subr.bf16.mxu0 %v2466_v56  ;;  %v2528_v55 = vld [vmem:[#allocation9 + $0x110] ss:$12 sps:$4 sm:$0xff]   ;;  %v2525_v56 = vld [vmem:[#allocation9 + $0x48] ss:$12 sps:$4 sm:$0xff]  }
 0x197   :  { %2289 = vmatprep.subr.bf16.mxu1 %v2503_v10  ;;  %v2545_v10 = vld [vmem:[#allocation9 + $0xa8] ss:$12 sps:$4 sm:$0xff]  }
 0x199   :  { %1301 = vmatpush1.bf16.msra.mxu0 %v2464_v57  ;;  %v2529_v57 = vld [vmem:[#allocation9 + $0x50] ss:$12 sps:$4 sm:$0xff]  }
 0x19a   :  { %1302 = vmatprep.subr.bf16.mxu0 %v2469_v58  ;;  %2290 = vmatpush3.bf16.msra.mxu1 %v2504_v11  ;;  %v2532_v58 = vld [vmem:[#allocation9 + $0x64] ss:$12 sps:$4 sm:$0xff]  }
 0x19b   :  { %2291 = vmatprep.subr.bf16.mxu1 %v2508_v13  ;;  %v2549_v11 = vld [vmem:[#allocation9 + $0xb0] ss:$12 sps:$4 sm:$0xff]  }
 0x19c   :  { %v2552_v13 = vld [vmem:[#allocation9 + $0xc4] ss:$12 sps:$4 sm:$0xff]  }
 0x19d   :  { %1303 = vmatpush1.bf16.msra.mxu0 %v2467_v59  ;;  %v2533_v59 = vld [vmem:[#allocation9 + $0x128] ss:$12 sps:$4 sm:$0xff]  }
 0x19e   :  { %1304 = vmatprep.subr.bf16.mxu0 %v2472_v60  ;;  %2292 = vmatpush3.bf16.msra.mxu1 %v2509_v15  ;;  %v2530_v60 = vld [vmem:[#allocation9 + $0x60] ss:$12 sps:$4 sm:$0xff]  }
 0x19f   :  { %1625 = vmatprep.subr.bf16.mxu1 %v2512_v16  ;;  %v2555_v16 = vld [vmem:[#allocation9 + $0xdc] ss:$12 sps:$4 sm:$0xff]  }
 0x1a1   :  { %1305 = vmatpush1.bf16.msra.mxu0 %v2470_v61  ;;  %v2534_v61 = vld [vmem:[#allocation9 + $0x68] ss:$12 sps:$4 sm:$0xff]  }
 0x1a2   :  { %1306 = vmatprep.subr.bf16.mxu0 %v2477_v62  ;;  %v2537_v62 = vld [vmem:[#allocation9 + $0x7c] ss:$12 sps:$4 sm:$0xff]  }
 0x1a5   :  { %1307 = vmatpush1.bf16.msra.mxu0 %v2475_v63  ;;  %v2538_v63 = vld [vmem:[#allocation9 + $0x140] ss:$12 sps:$4 sm:$0xff]  }
 0x1a6   :  { %1308 = vmatprep.subr.bf16.mxu0 %v2482_v0  ;;  %v2535_v0 = vld [vmem:[#allocation9 + $0x78] ss:$12 sps:$4 sm:$0xff]  }
 0x1a9   :  { %1309 = vmatpush1.bf16.msra.mxu0 %v2480_v1  ;;  %v2539_v1 = vld [vmem:[#allocation9 + $0x80] ss:$12 sps:$4 sm:$0xff]  }
 0x1aa   :  { %1310 = vmatprep.subr.bf16.mxu0 %v2487_v2  ;;  %v548_v2 = vrot.slane %v2954_v23, %v2943_v20  ;;  %v2556_v23 = vld [vmem:[#allocation9 + $0xf0] ss:$12 sps:$4 sm:$0xff]  }
 0x1ad   :  { %1311 = vmatpush1.bf16.msra.mxu0 %v2485_v3  ;;  %v2542_v3 = vld [vmem:[#allocation9 + $0x94] ss:$12 sps:$4 sm:$0xff]  }
 0x1ae   :  { %1312 = vmatprep.subr.bf16.mxu0 %v2492_v4  ;;  %v2543_v4 = vld [vmem:[#allocation9 + $0x158] ss:$12 sps:$4 sm:$0xff]  }
 0x1b1   :  { %1313 = vmatpush1.bf16.msra.mxu0 %v2490_v5  ;;  %v2540_v5 = vld [vmem:[#allocation9 + $0x90] ss:$12 sps:$4 sm:$0xff]  }
 0x1b2   :  { %1314 = vmatprep.subr.bf16.mxu0 %v2497_v6  ;;  %v2544_v6 = vld [vmem:[#allocation9 + $0x98] ss:$12 sps:$4 sm:$0xff]  }
 0x1b5   :  { %1315 = vmatpush1.bf16.msra.mxu0 %v2495_v7 }
 0x1b6   :  { %1316 = vmatprep.subr.bf16.mxu0 %v2502_v8  ;;  %v2547_v8 = vld [vmem:[#allocation9 + $0xac] ss:$12 sps:$4 sm:$0xff]  }
 0x1b9   :  { %1317 = vmatpush1.bf16.msra.mxu0 %v2500_v9  ;;  %v2548_v9 = vld [vmem:[#allocation9 + $0x170] ss:$12 sps:$4 sm:$0xff]  }
 0x1ba   :  { %1318 = vmatprep.subr.bf16.mxu0 %v2507_v12 }
 0x1bd   :  { %1319 = vmatpush1.bf16.msra.mxu0 %v2505_v14  ;;  %v2550_v14 = vld [vmem:[#allocation9 + $0xc0] ss:$12 sps:$4 sm:$0xff]  }
 0x1be   :  { %2299 = vmatprep.subr.bf16.mxu0 %v2513_v17  ;;  %v2553_v17 = vld [vmem:[#allocation9 + $0xd8] ss:$12 sps:$4 sm:$0xff]  }
 0x253   :  { %v2960_v27 = vpop.f32.mrb[0].mxu0 }
 0x254   :  { %v891_v28 = vpop.f32.mrb[0].mxu1  ;;  %v714_v30 = vpop.f32.mrb[1].mxu0  ;;  %v2401_v7 = vadd.f32 %v2960_v27, %v548_v2  ;;  %v2562_v27 = vld [vmem:[#allocation9 + $0x120] ss:$12 sps:$4 sm:$0xff]  }
 0x255   :  { %v2403_v29 = vadd.f32 %v891_v28, %v727_v24  ;;  %v893_v31 = vpop.f32.mrb[1].mxu1  ;;  %v2402_v32 = vadd.f32 %v714_v30, %v552_v25  ;;  %v716_v34 = vpop.f32.mrb[2].mxu0  ;;  %v2561_v24 = vld [vmem:[#allocation9 + $0x10c] ss:$12 sps:$4 sm:$0xff]   ;;  %v2559_v25 = vld [vmem:[#allocation9 + $0x108] ss:$12 sps:$4 sm:$0xff]  }
 0x256   :  { %v2404_v33 = vadd.f32 %v893_v31, %v731_v26  ;;  %v895_v35 = vpop.f32.mrb[2].mxu1  ;;  %v717_v37 = vpop.f32.mrb[3].mxu0  ;;  %v719_v12 = vmax.f32 %v2401_v7, 0.0  ;;  %v2564_v26 = vld [vmem:[#allocation9 + $0x124] ss:$12 sps:$4 sm:$0xff]  }
 0x257   :  { %v898_v36 = vmax.f32 %v2403_v29, 0.0  ;;  %v896_v38 = vpop.f32.mrb[3].mxu1  ;;  %v720_v40 = vmax.f32 %v2402_v32, 0.0  ;;  %v2567_v28 = vld [vmem:[#allocation9 + $0x13c] ss:$12 sps:$4 sm:$0xff]   ;;  %v2574_v34 = vld [vmem:[#allocation12 + $0x40] sm:$0xff]  }
 0x258   :  { %v899_v39 = vmax.f32 %v2404_v33, 0.0  ;;  %v900_v15 = vpack.c.bf16 %v719_v12, %v719_v12  ;;  %v2565_v29 = vld [vmem:[#allocation9 + $0x138] ss:$12 sps:$4 sm:$0xff]   ;;  %v2570_v30 = vld [vmem:[#allocation9 + $0x154] ss:$12 sps:$4 sm:$0xff]   ;;  %v2785_v35 = vmov 0.0  }
 0x259   :  { %v902_v44 = vpack.c.bf16 %v898_v36, %v898_v36  ;;  %v901_v47 = vpack.c.bf16 %v720_v40, %v720_v40  ;;  %v2568_v31 = vld [vmem:[#allocation9 + $0x150] ss:$12 sps:$4 sm:$0xff]   ;;  %v2573_v32 = vld [vmem:[#allocation9 + $0x16c] ss:$12 sps:$4 sm:$0xff]   ;;  %v2571_v33 = vld [vmem:[#allocation9 + $0x168] ss:$12 sps:$4 sm:$0xff]  }
 0x25a   :  { %v903_v41 = vpack.c.bf16 %v899_v39, %v899_v39  ;;  %v2575_v36 = vld [vmem:[#allocation12 + $0x48] sm:$0xff]   ;;  %v2576_v37 = vld [vmem:[#allocation12 + $0x50] sm:$0xff]   ;;  %v2577_v38 = vld [vmem:[#allocation12 + $0x58] sm:$0xff]  }
 0x25b   :  { %v2578_v39 = vld [vmem:[#allocation12 + $0x60] sm:$0xff]   ;;  %v2579_v40 = vld [vmem:[#allocation12 + $0x68] sm:$0xff]  }
 0x25c   :  { %1320 = vmatprep.mubr.bf16.mxu0 %v903_v41  ;;  %1361 = vmatprep.mubr.bf16.mxu1 %v903_v41  ;;  %v2580_v41 = vld [vmem:[#allocation12 + $0x70] sm:$0xff]  }
 0x25d   :  { %1321 = vmatmul.mubr.bf16.vlgmr.msra.gmra.mrb[4].mxu0 %v902_v44  ;;  %1362 = vmatmul.mubr.bf16.vlgmr.msra.gmra.mrb[4].mxu1 %v902_v44  ;;  %v2583_v44 = vld [vmem:[#allocation10] sm:$0xff]  }
 0x25e   :  { %1626 = vmatpush1.bf16.msra.mxu1 %v2510_v42  ;;  %2300 = vmatpush3.bf16.msra.mxu0 %v2514_v43  ;;  %v2581_v42 = vld [vmem:[#allocation12 + $0x78] sm:$0xff]   ;;  %v2582_v43 = vld [vmem:[#allocation10 + $0x40] sm:$0xff]  }
 0x25f   :  { %1657 = vmatprep.mubr.bf16.mxu1 %v901_v47  ;;  %1698 = vmatprep.mubr.bf16.mxu0 %v901_v47  ;;  %v2586_v47 = vld [vmem:[#allocation10 + $0x50] sm:$0xff]  }
 0x260   :  { %1627 = vmatprep.subr.bf16.mxu1 %v2517_v45  ;;  %2301 = vmatprep.subr.bf16.mxu0 %v2518_v46  ;;  %v2584_v45 = vld [vmem:[#allocation10 + $0x48] sm:$0xff]  }
 0x261   :  { %v2585_v46 = vld [vmem:[#allocation10 + $0x8] sm:$0xff]  }
 0x262   :  { %1628 = vmatpush1.bf16.msra.mxu1 %v2515_v48  ;;  %2302 = vmatpush3.bf16.msra.mxu0 %v2519_v49  ;;  %v2587_v48 = vld [vmem:[#allocation10 + $0x10] sm:$0xff]   ;;  %v2588_v49 = vld [vmem:[#allocation10 + $0x58] sm:$0xff]  }
 0x263   :  { %1629 = vmatprep.subr.bf16.mxu1 %v2522_v50  ;;  %2303 = vmatprep.subr.bf16.mxu0 %v2523_v51  ;;  %v2589_v50 = vld [vmem:[#allocation10 + $0x18] sm:$0xff]   ;;  %v2590_v51 = vld [vmem:[#allocation10 + $0x60] sm:$0xff]  }
 0x266   :  { %1630 = vmatpush1.bf16.msra.mxu1 %v2520_v52  ;;  %2304 = vmatpush3.bf16.msra.mxu0 %v2524_v53  ;;  %v2591_v52 = vld [vmem:[#allocation10 + $0x20] sm:$0xff]   ;;  %v2592_v53 = vld [vmem:[#allocation10 + $0x68] sm:$0xff]  }
 0x267   :  { %1631 = vmatprep.subr.bf16.mxu1 %v2527_v54  ;;  %2305 = vmatprep.subr.bf16.mxu0 %v2528_v55  ;;  %v2593_v54 = vld [vmem:[#allocation10 + $0x28] sm:$0xff]   ;;  %v2594_v55 = vld [vmem:[#allocation10 + $0x70] sm:$0xff]  }
 0x26a   :  { %1632 = vmatpush1.bf16.msra.mxu1 %v2525_v56  ;;  %2306 = vmatpush3.bf16.msra.mxu0 %v2529_v57  ;;  %v2595_v56 = vld [vmem:[#allocation10 + $0x30] sm:$0xff]   ;;  %v2596_v57 = vld [vmem:[#allocation10 + $0x78] sm:$0xff]  }
 0x26b   :  { %1633 = vmatprep.subr.bf16.mxu1 %v2532_v58  ;;  %2307 = vmatprep.subr.bf16.mxu0 %v2533_v59  ;;  %v2597_v58 = vld [vmem:[#allocation10 + $0x38] sm:$0xff]  }
 0x26e   :  { %1634 = vmatpush1.bf16.msra.mxu1 %v2530_v60  ;;  %2308 = vmatpush3.bf16.msra.mxu0 %v2534_v61 }
 0x26f   :  { %1635 = vmatprep.subr.bf16.mxu1 %v2537_v62  ;;  %2309 = vmatprep.subr.bf16.mxu0 %v2538_v63 }
 0x272   :  { %1636 = vmatpush1.bf16.msra.mxu1 %v2535_v0  ;;  %2310 = vmatpush3.bf16.msra.mxu0 %v2539_v1 }
 0x273   :  { %1637 = vmatprep.subr.bf16.mxu1 %v2542_v3  ;;  %2311 = vmatprep.subr.bf16.mxu0 %v2543_v4  ;;  %v1718_v4 = vsub.s32 2, %v2940_v19 }
 0x276   :  { %1638 = vmatpush1.bf16.msra.mxu1 %v2540_v5  ;;  %2312 = vmatpush3.bf16.msra.mxu0 %v2544_v6  ;;  %v1706_v5 = vld [vmem:[%s3009_s8] sm:$0x7] }
 0x277   :  { %1639 = vmatprep.subr.bf16.mxu1 %v2547_v8  ;;  %2313 = vmatprep.subr.bf16.mxu0 %v2548_v9  ;;  %v1719_v9 = vrot.slane %v1706_v5, %v1718_v4  ;;  %v1715_v19 = vrot.slane %v1706_v5, %v2949_v22  ;;  %v2600_v22 = vld [vmem:[#allocation12 + $0x10] sm:$0xff]  }
 0x27a   :  { %1640 = vmatpush1.bf16.msra.mxu1 %v2545_v10  ;;  %2314 = vmatpush3.bf16.msra.mxu0 %v2549_v11 }
 0x27b   :  { %1641 = vmatprep.subr.bf16.mxu1 %v2552_v13  ;;  %2321 = vmatprep.subr.bf16.mxu0 %v2582_v43 }
 0x27d   :  { %1699 = vmatmul.mubr.bf16.vlgmr.msra.gmra.mrb[8].mxu0 %v900_v15 }
 0x27e   :  { %1642 = vmatpush1.bf16.msra.mxu1 %v2550_v14  ;;  %2322 = vmatpush3.bf16.msra.mxu0 %v2583_v44 }
 0x27f   :  { %1643 = vmatprep.subr.bf16.mxu1 %v2555_v16  ;;  %2323 = vmatprep.subr.bf16.mxu0 %v2584_v45  ;;  %v1711_v16 = vrot.slane %v1706_v5, %v2943_v20  ;;  %v2598_v20 = vld [vmem:[#allocation12] sm:$0xff]   ;;  %v2242_v45 = vld [vmem:[%s3010_s9] ss:$0 sm:$0xff] }
 0x282   :  { %1644 = vmatpush1.bf16.msra.mxu1 %v2553_v17  ;;  %2324 = vmatpush3.bf16.msra.mxu0 %v2585_v46 }
 0x283   :  { %1645 = vmatprep.subr.bf16.mxu1 %v2558_v21  ;;  %2325 = vmatprep.subr.bf16.mxu0 %v2586_v47 }
 0x286   :  { %1646 = vmatpush1.bf16.msra.mxu1 %v2556_v23  ;;  %2326 = vmatpush3.bf16.msra.mxu0 %v2587_v48 }
 0x287   :  { %1647 = vmatprep.subr.bf16.mxu1 %v2561_v24  ;;  %2327 = vmatprep.subr.bf16.mxu0 %v2588_v49 }
 0x28a   :  { %1648 = vmatpush1.bf16.msra.mxu1 %v2559_v25  ;;  %2328 = vmatpush3.bf16.msra.mxu0 %v2589_v50 }
 0x28b   :  { %1649 = vmatprep.subr.bf16.mxu1 %v2564_v26  ;;  %2329 = vmatprep.subr.bf16.mxu0 %v2590_v51 }
 0x28e   :  { %1650 = vmatpush1.bf16.msra.mxu1 %v2562_v27  ;;  %2330 = vmatpush3.bf16.msra.mxu0 %v2591_v52 }
 0x28f   :  { %1651 = vmatprep.subr.bf16.mxu1 %v2567_v28  ;;  %2331 = vmatprep.subr.bf16.mxu0 %v2592_v53 }
 0x292   :  { %1652 = vmatpush1.bf16.msra.mxu1 %v2565_v29  ;;  %2332 = vmatpush3.bf16.msra.mxu0 %v2593_v54  ;;  %v2275_v54 = vld [vmem:[%s3010_s9 + $0x1] ss:$0 sm:$0xff] }
 0x293   :  { %1653 = vmatprep.subr.bf16.mxu1 %v2570_v30  ;;  %2333 = vmatprep.subr.bf16.mxu0 %v2594_v55 }
 0x296   :  { %1654 = vmatpush1.bf16.msra.mxu1 %v2568_v31  ;;  %2334 = vmatpush3.bf16.msra.mxu0 %v2595_v56 }
 0x297   :  { %1655 = vmatprep.subr.bf16.mxu1 %v2573_v32  ;;  %2335 = vmatprep.subr.bf16.mxu0 %v2596_v57 }
 0x29a   :  { %1656 = vmatpush1.bf16.msra.mxu1 %v2571_v33  ;;  %2336 = vmatpush3.bf16.msra.mxu0 %v2597_v58  ;;  %v2599_v33 = vld [vmem:[#allocation12 + $0x8] sm:$0xff]  }
 0x29b   :  { %2361 = vmatprep.subr.bf16.mxu1 %v2785_v35  ;;  %2381 = vmatprep.subr.bf16.mxu0 %v2785_v35 }
 0x29d   :  { %1658 = vmatmul.mubr.bf16.vlgmr.msra.gmra.mrb[8].mxu1 %v900_v15 }
 0x29e   :  { %2362 = vmatpush3.bf16.msra.mxu1 %v2574_v34  ;;  %2377 = vmatprep.mubr.msk.bf16.mxu1 %vm2786_vm0, %v2785_v35  ;;  %v2601_v34 = vld [vmem:[#allocation12 + $0x18] sm:$0xff]  }
 0x29f   :  { %2363 = vmatprep.subr.bf16.mxu1 %v2785_v35 }
 0x2a2   :  { %2364 = vmatpush3.bf16.msra.mxu1 %v2575_v36  ;;  %v2602_v36 = vld [vmem:[#allocation12 + $0x20] sm:$0xff]  }
 0x2a3   :  { %2365 = vmatprep.subr.bf16.mxu1 %v2785_v35 }
 0x2a6   :  { %2366 = vmatpush3.bf16.msra.mxu1 %v2576_v37  ;;  %v2603_v37 = vld [vmem:[#allocation12 + $0x28] sm:$0xff]  }
 0x2a7   :  { %2367 = vmatprep.subr.bf16.mxu1 %v2785_v35 }
 0x2aa   :  { %2368 = vmatpush3.bf16.msra.mxu1 %v2577_v38  ;;  %v2604_v38 = vld [vmem:[#allocation12 + $0x30] sm:$0xff]  }
 0x2ab   :  { %2369 = vmatprep.subr.bf16.mxu1 %v2785_v35 }
 0x2ae   :  { %2370 = vmatpush3.bf16.msra.mxu1 %v2578_v39  ;;  %v2605_v39 = vld [vmem:[#allocation12 + $0x38] sm:$0xff]  }
 0x2af   :  { %2371 = vmatprep.subr.bf16.mxu1 %v2785_v35 }
 0x2b2   :  { %2372 = vmatpush3.bf16.msra.mxu1 %v2579_v40 }
 0x2b3   :  { %2373 = vmatprep.subr.bf16.mxu1 %v2785_v35 }
 0x2b6   :  { %2374 = vmatpush3.bf16.msra.mxu1 %v2580_v41 }
 0x2b7   :  { %2375 = vmatprep.subr.bf16.mxu1 %v2785_v35 }
 0x2ba   :  { %2376 = vmatpush3.bf16.msra.mxu1 %v2581_v42 }
 0x330   :  { %v1322_v59 = vpop.f32.mrb[4].mxu0  ;;  %v2293_v60 = vpop.f32.mrb[4].mxu1 }
 0x331   :  { %v1324_v61 = vpop.f32.mrb[5].mxu0  ;;  %v2294_v62 = vpop.f32.mrb[5].mxu1 }
 0x332   :  { %v2295_v63 = vadd.f32 %v2294_v62, %v2293_v60  ;;  %v1326_v0 = vpop.f32.mrb[6].mxu0  ;;  %v2296_v1 = vpop.f32.mrb[6].mxu1 }
 0x333   :  { %v1327_v2 = vpop.f32.mrb[7].mxu0  ;;  %v2297_v3 = vpop.f32.mrb[7].mxu1  ;;  %v2122_v0 = vand.u32 127, %v545_v18 }
 0x335   :  { %vm2129_vm1 = vcmp.eq.s32.totalorder %v2122_v0, 0 }
 0x350   :  { %v2315_v6 = vpop.f32.mrb[8].mxu0 }
 0x351   :  { %v2316_v7 = vpop.f32.mrb[9].mxu0 }
 0x352   :  { %v2317_v8 = vadd.f32 %v2316_v7, %v2315_v6  ;;  %v2318_v10 = vpop.f32.mrb[10].mxu0 }
 0x353   :  { %v2319_v11 = vpop.f32.mrb[11].mxu0 }
 0x354   :  { %v1701_v12 = vadd.f32 %v2317_v8, %v2295_v63 }
 0x356   :  { %v1725_v13 = vadd.f32 %v1719_v9, %v1701_v12 }
 0x358   :  { %v1728_v14 = vmax.f32 %v1725_v13, 0.0 }
 0x35a   :  { %v1731_v15 = vpack.c.bf16 %v1728_v14, %v1728_v14 }
 0x35c   :  { %2378 = vmatmul.mubr.bf16.vlgmr.msra.gmra.mrb[12].mxu1 %v1731_v15 }
 0x370   :  { %v1659_v17 = vpop.f32.mrb[8].mxu1 }
 0x371   :  { %v1660_v21 = vadd.f32 %v1659_v17, %v1322_v59  ;;  %v1661_v23 = vpop.f32.mrb[9].mxu1 }
 0x372   :  { %v1662_v24 = vadd.f32 %v1661_v23, %v1324_v61  ;;  %v1663_v25 = vpop.f32.mrb[10].mxu1 }
 0x373   :  { %v1723_v26 = vadd.f32 %v1711_v16, %v1660_v21  ;;  %v1664_v27 = vpop.f32.mrb[11].mxu1 }
 0x374   :  { %v1724_v28 = vadd.f32 %v1715_v19, %v1662_v24 }
 0x375   :  { %v1726_v29 = vmax.f32 %v1723_v26, 0.0 }
 0x376   :  { %v1727_v30 = vmax.f32 %v1724_v28, 0.0 }
 0x377   :  { %v1729_v32 = vpack.c.bf16 %v1726_v29, %v1726_v29 }
 0x378   :  { %v1730_v31 = vpack.c.bf16 %v1727_v30, %v1727_v30 }
 0x37a   :  { %1897 = vmatprep.mubr.bf16.mxu0 %v1730_v31 }
 0x37b   :  { %1898 = vmatmul.mubr.bf16.vlgmr.msra.gmra.mrb[12].mxu0 %v1729_v32 }
 0x37c   :  { %2397 = vmatprep.mubr.msk.bf16.mxu0 %vm2786_vm0, %v2785_v35  ;;  %2382 = vmatpush3.bf16.msra.mxu0 %v2598_v20 }
 0x37d   :  { %2383 = vmatprep.subr.bf16.mxu0 %v2785_v35 }
 0x380   :  { %2384 = vmatpush3.bf16.msra.mxu0 %v2599_v33 }
 0x381   :  { %2385 = vmatprep.subr.bf16.mxu0 %v2785_v35 }
 0x384   :  { %2386 = vmatpush3.bf16.msra.mxu0 %v2600_v22 }
 0x385   :  { %2387 = vmatprep.subr.bf16.mxu0 %v2785_v35 }
 0x388   :  { %2388 = vmatpush3.bf16.msra.mxu0 %v2601_v34 }
 0x389   :  { %2389 = vmatprep.subr.bf16.mxu0 %v2785_v35 }
 0x38c   :  { %2390 = vmatpush3.bf16.msra.mxu0 %v2602_v36 }
 0x38d   :  { %2391 = vmatprep.subr.bf16.mxu0 %v2785_v35 }
 0x390   :  { %2392 = vmatpush3.bf16.msra.mxu0 %v2603_v37 }
 0x391   :  { %2393 = vmatprep.subr.bf16.mxu0 %v2785_v35 }
 0x394   :  { %2394 = vmatpush3.bf16.msra.mxu0 %v2604_v38 }
 0x395   :  { %2395 = vmatprep.subr.bf16.mxu0 %v2785_v35  ;;  %v2787_v35 = vmov 0  }
 0x396   :  { %2445 = vset.pattern.permute.xlu0 %v2787_v35 }
 0x398   :  { %2396 = vmatpush3.bf16.msra.mxu0 %v2605_v39 }
 0x42f   :  { %v2021_v40 = vpop.f32.mrb[12].mxu1 }
 0x430   :  { %v2379_v41 = vpop.f32.mrb[13].mxu1 }
 0x431   :  { %v2024_v42 = vpop.f32.mrb[14].mxu1 }
 0x432   :  { %v2380_v43 = vpop.f32.mrb[15].mxu1 }
 0x44e   :  { %v2337_v44 = vpop.f32.mrb[12].mxu0 }
 0x44f   :  { %v2338_v46 = vpop.f32.mrb[13].mxu0 }
 0x450   :  { %v2339_v47 = vadd.f32 %v2338_v46, %v2337_v44  ;;  %v2340_v48 = vpop.f32.mrb[14].mxu0 }
 0x451   :  { %v2341_v49 = vpop.f32.mrb[15].mxu0 }
 0x452   :  { %v1900_v50 = vadd.f32 %v2339_v47, %v2242_v45 }
 0x454   :  { %v1905_v51 = vmax.f32 %v1900_v50, 0.0 }
 0x456   :  { %v1906_v52 = vpack.c.bf16 %v1905_v51, %v1905_v51 }
 0x458   :  { %2398 = vmatmul.mubr.bf16.vlgmr.msra.gmra.mrb[16].mxu0 %v1906_v52 }
 0x52b   :  { %v2109_v53 = vpop.f32.mrb[16].mxu0 }
 0x52c   :  { %v2110_v55 = vadd.f32 %v2109_v53, %v2021_v40  ;;  %v2399_v56 = vpop.f32.mrb[17].mxu0 }
 0x52d   :  { %v2112_v57 = vpop.f32.mrb[18].mxu0 }
 0x52e   :  { %v2120_v58 = vadd.f32 %v2275_v54, %v2110_v55  ;;  %v2400_v59 = vpop.f32.mrb[19].mxu0 }
 0x530   :  { %v2276_v60 = vmul.f32 -1.442695, %v2120_v58 }
 0x532   :  { %2606 = vpow2.f32 %v2276_v60 }
 0x53c   :  { %v2607_v61 = vpop.eup %2606 }
 0x53d   :  { %v2126_v62 = vadd.f32 1.0, %v2607_v61 }
 0x53f   :  { %2608 = vrcp.f32 %v2126_v62 }
 0x549   :  { %v2609_v63 = vpop.eup %2608 }
 0x54a   :  { %2132 = vperm.xlu0 %2445, %v2609_v63  }
 0x5c9   :  { %v2133_v1 = vpop.permute.xlu0 %2132 }
 0x5ca   :  { %v2135_v2 = vsel %vm2129_vm1, %v2133_v1, %v2120_v58 }
 0x5cb   :  { %2136 = vst [vmem:[%s3011_s10] sm:$0xff] %v2135_v2 }
 0x5cc   :  { %2141 = vsyncpa [#allocation3], 1 }
 0x5cd   :  { %2142 = vsyncpa [#allocation5], 1 }
 0x5ce   :  { %2143 = vsyncpa [#allocation8], 1 }
 0x5cf   :  { %2144 = vsyncpa [#allocation11], 1 }

</bundles_post_ra>
